<compile_context>
chip_gen: v7x
topology: tpu7x:2x2x1
jax: 0.10.0
libtpu: 0.0.40
codegen_flags: <defaults>
</compile_context>

<pallas_src>
import functools

import numpy as np
import jax
import jax.numpy as jnp
from jax import lax
from jax.experimental import pallas as pl
from jax.experimental.pallas import tpu as pltpu


def _round_up(x, m):
    return ((x + m - 1) // m) * m


def _num_tensorcores():
    """Best-effort TensorCores-per-chip (2 on v7x / megacore parts, else 1)."""
    try:
        kind = jax.local_devices()[0].device_kind.lower()
    except Exception:
        return 1
    if ("v7" in kind) or ("v5p" in kind) or ("v4" in kind):
        return 2
    return 1


def _single_tweet_rnn_kernel(x_ref, len_ref, wih_ref, whh_ref, b_ref,
                             wout_ref, bout_ref, out_ref,
                             gx_ref, hs_ref, *, gate_width, unroll):
    """LSTM recurrence + output head + log-softmax(over time), fully in VMEM.

    x_ref    : (T, Bt, D)    bf16  time-major input block
    len_ref  : (Bt, 1)       i32   per-row valid length
    wih_ref  : (D, G)        bf16  pre-transposed W_ih (gate blocks of width Hg)
    whh_ref  : (Hg, G)       bf16  pre-transposed W_hh
    b_ref    : (1, G)        f32   b_ih + b_hh
    wout_ref : (Hg, Np)      bf16  output head padded to Np=128 lanes
    bout_ref : (1, Np)       f32
    out_ref  : (T, Bt, Np)   f32   lane-dense log-softmax output
    gx_ref   : (T, Bt, G)    bf16  scratch: hoisted input projection
    hs_ref   : (T, Bt, Hg)   bf16  scratch: raw hidden states
    """
    T, B, D = x_ref.shape
    Hg = gate_width
    G = 4 * Hg

    # ---- hoisted input projection: one bf16 MXU matmul for all timesteps,
    # bias folded in here so the serial loop only does h @ W_hh.
    # TODO(synk): for very long sequences, chunk this projection over time so
    # the gx scratch stays within v7x's 64 MiB VMEM.
    x2 = x_ref[...].reshape(T * B, D)
    gx = (jnp.dot(x2, wih_ref[...], preferred_element_type=jnp.float32)
          + b_ref[...])
    gx_ref[...] = gx.reshape(T, B, G).astype(gx_ref.dtype)

    # ---- serial LSTM recurrence; h/c live in registers (f32), matmul
    # operands in bf16.  With the packed-gate layout (4H <= 128), W_hh is a
    # single small (H, 4H) MXU tile, so per-step weight streaming is minimal.
    # TODO(synk): for the large-H (per-gate padded) layout, hold W_hh resident
    # across the time loop via pltpu.matmul_push_rhs/matmul_acc_lhs/matmul_pop.
    def step(t, carry):
        h, c = carry
        gates = gx_ref[t].astype(jnp.float32) + jnp.dot(
            h.astype(whh_ref.dtype), whh_ref[...],
            preferred_element_type=jnp.float32)
        # PyTorch LSTM gate order: i, f, g, o (contiguous Hg-wide blocks).
        i_g = jax.nn.sigmoid(gates[:, 0 * Hg:1 * Hg])
        f_g = jax.nn.sigmoid(gates[:, 1 * Hg:2 * Hg])
        g_g = jnp.tanh(gates[:, 2 * Hg:3 * Hg])
        o_g = jax.nn.sigmoid(gates[:, 3 * Hg:4 * Hg])
        c_new = f_g * c + i_g * g_g
        h_new = o_g * jnp.tanh(c_new)
        hs_ref[t] = h_new.astype(hs_ref.dtype)
        return (h_new, c_new)

    # self.rnn(x) is called without a hidden argument -> zero initial state.
    # NOTE: any padded hidden lanes stay exactly zero only because c0 = 0 and
    # padded gate rows/columns are zero; do not change c0 without revisiting.
    h0 = jnp.zeros((B, Hg), jnp.float32)
    c0 = jnp.zeros((B, Hg), jnp.float32)
    lax.fori_loop(0, T, step, (h0, c0), unroll=unroll)

    # ---- post-loop: pack/pad_packed mask built in-kernel from lengths,
    # output head, log-softmax over the time axis; lane-dense store.
    t_idx = lax.broadcasted_iota(jnp.int32, (T, B, Hg), 0)
    valid = t_idx < len_ref[...][None, :, :]               # (T, B, Hg) bool
    h_all = jnp.where(valid, hs_ref[...], 0).astype(wout_ref.dtype)
    logits = (jnp.dot(h_all.reshape(T * B, Hg), wout_ref[...],
                      preferred_element_type=jnp.float32)
              + bout_ref[...]).reshape(T, B, -1)           # (T, B, Np) f32
    m = jnp.max(logits, axis=0, keepdims=True)
    z = logits - m
    lse = jnp.log(jnp.sum(jnp.exp(z), axis=0, keepdims=True))
    out_ref[...] = z - lse


def single_tweet_rnn_forward(x, x_lengths, params):
    """Forward pass matching SingleTweetRNN.forward (rnn_type='lstm', 1 layer).

    x         : (B, T, D) float32, batch-first (PyTorch convention)
    x_lengths : (B,) host-side integer lengths
    returns   : (B, T_eff, 2) with T_eff = max(x_lengths)
    """
    B, T, D = x.shape
    H = params["w_hh"].shape[1]
    # Per-gate lane width: pack the 4 gates contiguously when they fit in a
    # single 128-lane vreg (H <= 32); otherwise pad each gate block to a
    # lane-aligned multiple of 128.
    Hg = H if 4 * H <= 128 else _round_up(H, 128)
    G = 4 * Hg
    Np = 128                      # lane-dense padded output width (>= 2)

    # TODO(synk): lengths are read host-side to fix T_eff (pad_packed truncates
    # to max length); bucket T_eff to a few static sizes in a real pipeline to
    # avoid per-length recompiles.
    lengths = np.asarray(x_lengths).reshape(B).astype(np.int32)
    T_eff = int(lengths.max())

    # --- layout plumbing / parameter packing (one-time, plain JAX) ---
    x_tm = jnp.transpose(x[:, :T_eff, :], (1, 0, 2)).astype(jnp.bfloat16)

    def pad_gate_blocks(w):       # (4H, X) -> (4Hg, X), zero-pad per gate
        w4 = w.reshape(4, H, -1)
        return jnp.pad(w4, ((0, 0), (0, Hg - H), (0, 0))).reshape(4 * Hg, -1)

    wih_t = jnp.transpose(pad_gate_blocks(params["w_ih"])
                          ).astype(jnp.bfloat16)                     # (D, G)
    whh_t = jnp.transpose(jnp.pad(pad_gate_blocks(params["w_hh"]),
                                  ((0, 0), (0, Hg - H)))
                          ).astype(jnp.bfloat16)                     # (Hg, G)
    b = (params["b_ih"] + params["b_hh"]).reshape(4, H)
    b_p = jnp.pad(b, ((0, 0), (0, Hg - H))).reshape(1, G).astype(jnp.float32)
    wout_p = jnp.pad(jnp.transpose(params["w_out"]),
                     ((0, Hg - H), (0, Np - 2))).astype(jnp.bfloat16)  # (Hg, Np)
    bout_p = jnp.pad(params["b_out"].reshape(1, 2),
                     ((0, 0), (0, Np - 2))).astype(jnp.float32)        # (1, Np)
    lens_col = jnp.asarray(lengths, jnp.int32).reshape(B, 1)           # (B, 1)

    # Batch tile: the recurrence is serial in T, so never make the grid longer
    # than the number of physical TensorCores.  Single-TC chips (v5e/v6e) get
    # one grid step with the full batch; 2-TC chips split the batch in half.
    ncores = _num_tensorcores()
    if ncores > 1 and B % 16 == 0:
        bt = B // 2
    else:
        bt = B
    grid = (B // bt,)
    unroll = int(min(T_eff, 8))

    # Explicit VMEM budget (scratches + double-buffered I/O), with headroom.
    def _nbytes(shape, dt):
        return int(np.prod(shape)) * jnp.dtype(dt).itemsize
    est = (2 * (_nbytes((T_eff, bt, D), jnp.bfloat16)
                + _nbytes((bt, 1), jnp.int32)
                + _nbytes((T_eff, bt, Np), jnp.float32))
           + _nbytes((D, G), jnp.bfloat16) + _nbytes((Hg, G), jnp.bfloat16)
           + _nbytes((1, G), jnp.float32) + _nbytes((Hg, Np), jnp.bfloat16)
           + _nbytes((1, Np), jnp.float32)
           + _nbytes((T_eff, bt, G), jnp.bfloat16)
           + _nbytes((T_eff, bt, Hg), jnp.bfloat16))
    vmem_limit = int(min(64 * 2**20, max(32 * 2**20, 2 * est)))

    kernel = functools.partial(_single_tweet_rnn_kernel,
                               gate_width=Hg, unroll=unroll)
    # TODO(synk): self.dropout_layer (p=0.0 default / eval mode) is identity.
    out_tm = pl.pallas_call(
        kernel,
        out_shape=jax.ShapeDtypeStruct((T_eff, B, Np), jnp.float32),
        grid=grid,
        in_specs=[
            pl.BlockSpec((T_eff, bt, D), lambda i: (0, i, 0)),    # x (time-major)
            pl.BlockSpec((bt, 1), lambda i: (i, 0)),              # lengths
            pl.BlockSpec((D, G), lambda i: (0, 0)),               # W_ih^T
            pl.BlockSpec((Hg, G), lambda i: (0, 0)),              # W_hh^T
            pl.BlockSpec((1, G), lambda i: (0, 0)),               # bias
            pl.BlockSpec((Hg, Np), lambda i: (0, 0)),             # W_out^T
            pl.BlockSpec((1, Np), lambda i: (0, 0)),              # b_out
        ],
        out_specs=pl.BlockSpec((T_eff, bt, Np), lambda i: (0, i, 0)),
        scratch_shapes=[pltpu.VMEM((T_eff, bt, G), jnp.bfloat16),   # gates_x
                        pltpu.VMEM((T_eff, bt, Hg), jnp.bfloat16)], # h history
        compiler_params=pltpu.CompilerParams(
            dimension_semantics=("parallel",),
            vmem_limit_bytes=vmem_limit),
    )(x_tm, lens_col, wih_t, whh_t, b_p, wout_p, bout_p)

    # Slice off the lane padding; back to the PyTorch (B, T, 2) convention.
    return jnp.transpose(out_tm[:, :, :2], (1, 0, 2))


def init_params(key, input_dim, hidden_dim):
    """Deterministic parameter init, PyTorch-default-style U(-1/sqrt(H), 1/sqrt(H))."""
    k = 1.0 / np.sqrt(hidden_dim)
    ks = jax.random.split(key, 6)
    u = lambda kk, shape: jax.random.uniform(kk, shape, jnp.float32, -k, k)
    return {
        "w_ih": u(ks[0], (4 * hidden_dim, input_dim)),
        "w_hh": u(ks[1], (4 * hidden_dim, hidden_dim)),
        "b_ih": u(ks[2], (4 * hidden_dim,)),
        "b_hh": u(ks[3], (4 * hidden_dim,)),
        "w_out": u(ks[4], (2, hidden_dim)),
        "b_out": u(ks[5], (2,)),
    }


def _reference_forward(x, lengths, params):
    """Pure-JAX f32 reference with identical semantics (for a sanity check)."""
    B, T, D = x.shape
    H = params["w_hh"].shape[1]
    lengths = jnp.asarray(lengths, jnp.int32).reshape(B)
    wih_t = params["w_ih"].T
    whh_t = params["w_hh"].T
    b = params["b_ih"] + params["b_hh"]

    def step(carry, xs):
        h, c = carry
        x_t, t = xs
        gates = x_t @ wih_t + h @ whh_t + b
        i = jax.nn.sigmoid(gates[:, 0 * H:1 * H])
        f = jax.nn.sigmoid(gates[:, 1 * H:2 * H])
        g = jnp.tanh(gates[:, 2 * H:3 * H])
        o = jax.nn.sigmoid(gates[:, 3 * H:4 * H])
        c = f * c + i * g
        h = o * jnp.tanh(c)
        h_pad = jnp.where((lengths > t)[:, None], h, 0.0)
        return (h, c), h_pad

    x_tm = jnp.transpose(x, (1, 0, 2))
    (_, _), hs = lax.scan(step, (jnp.zeros((B, H)), jnp.zeros((B, H))),
                          (x_tm, jnp.arange(T)))
    out = jnp.transpose(hs, (1, 0, 2)) @ params["w_out"].T + params["b_out"]
    return jax.nn.log_softmax(out, axis=1)   # dim=1 == time axis


if __name__ == "__main__":
    B, T, D, H = 16, 8, 16, 32
    key = jax.random.PRNGKey(0)
    kx, kp = jax.random.split(key)

    x = jax.random.normal(kx, (B, T, D), dtype=jnp.float32)
    x_lengths = np.array([8, 5, 7, 8, 3, 6, 8, 4,
                          2, 8, 6, 7, 8, 1, 5, 8], dtype=np.int32)  # max == T
    params = init_params(kp, D, H)

    out = single_tweet_rnn_forward(x, x_lengths, params)
    out = jax.block_until_ready(out)
    assert out.shape == (B, T, 2), out.shape

    ref = jax.block_until_ready(_reference_forward(x, x_lengths, params))
    # bf16 matmul path vs. f32 reference -> slightly looser tolerance.
    np.testing.assert_allclose(np.asarray(out), np.asarray(ref),
                               atol=2e-2, rtol=2e-2)

    print("KERNEL_OK")
</pallas_src>

<mosaic_0001>
module attributes {stable_mosaic.version = 11 : i64} {
  func.func @_single_tweet_rnn_kernel(%arg0: i32, %arg1: memref<8x16x16xbf16, #tpu.memory_space<vmem>>, %arg2: memref<16x1xi32, #tpu.memory_space<vmem>>, %arg3: memref<16x128xbf16, #tpu.memory_space<vmem>>, %arg4: memref<32x128xbf16, #tpu.memory_space<vmem>>, %arg5: memref<1x128xf32, #tpu.memory_space<vmem>>, %arg6: memref<32x128xbf16, #tpu.memory_space<vmem>>, %arg7: memref<1x128xf32, #tpu.memory_space<vmem>>, %arg8: memref<8x16x128xf32, #tpu.memory_space<vmem>>, %arg9: memref<8x16x128xbf16, #tpu.memory_space<vmem>>, %arg10: memref<8x16x32xbf16, #tpu.memory_space<vmem>>) attributes {dimension_semantics = [#tpu.dimension_semantics<parallel>], iteration_bounds = array<i64: 1>, scalar_prefetch = 0 : i64, scratch_operands = 2 : i64, tpu.core_type = #tpu.core_type<tc>, window_params = [{transform_indices = @transform_0, window_bounds = array<i64: 8, 16, 16>}, {transform_indices = @transform_1, window_bounds = array<i64: 16, 1>}, {pipeline_mode = #tpu.pipeline_mode<synchronous>, transform_indices = @transform_2, window_bounds = array<i64: 16, 128>}, {pipeline_mode = #tpu.pipeline_mode<synchronous>, transform_indices = @transform_3, window_bounds = array<i64: 32, 128>}, {pipeline_mode = #tpu.pipeline_mode<synchronous>, transform_indices = @transform_4, window_bounds = array<i64: 1, 128>}, {pipeline_mode = #tpu.pipeline_mode<synchronous>, transform_indices = @transform_5, window_bounds = array<i64: 32, 128>}, {pipeline_mode = #tpu.pipeline_mode<synchronous>, transform_indices = @transform_6, window_bounds = array<i64: 1, 128>}, {transform_indices = @transform_7, window_bounds = array<i64: 8, 16, 128>}]} {
    %c0 = arith.constant 0 : index
    %c0_0 = arith.constant 0 : index
    %c0_1 = arith.constant 0 : index
    %0 = vector.load %arg1[%c0, %c0_0, %c0_1] : memref<8x16x16xbf16, #tpu.memory_space<vmem>>, vector<8x16x16xbf16>
    %1 = vector.shape_cast %0 : vector<8x16x16xbf16> to vector<128x16xbf16>
    %c0_2 = arith.constant 0 : index
    %c0_3 = arith.constant 0 : index
    %2 = vector.load %arg3[%c0_2, %c0_3] : memref<16x128xbf16, #tpu.memory_space<vmem>>, vector<16x128xbf16>
    %cst = arith.constant dense<0.000000e+00> : vector<128x128xf32>
    %3 = tpu.matmul %1, %2, %cst {dimension_numbers = #tpu.dot_dimension_numbers<[1], [0], [0], [1], [0, 0, 1, 1], [], []>} : vector<128x16xbf16>, vector<16x128xbf16>, vector<128x128xf32> -> vector<128x128xf32>
    %c0_4 = arith.constant 0 : index
    %c0_5 = arith.constant 0 : index
    %4 = vector.load %arg5[%c0_4, %c0_5] : memref<1x128xf32, #tpu.memory_space<vmem>>, vector<1x128xf32>
    %5 = vector.broadcast %4 : vector<1x128xf32> to vector<128x128xf32>
    %6 = arith.addf %3, %5 : vector<128x128xf32>
    %7 = vector.shape_cast %6 : vector<128x128xf32> to vector<8x16x128xf32>
    %8 = arith.truncf %7 : vector<8x16x128xf32> to vector<8x16x128xbf16>
    %c0_6 = arith.constant 0 : index
    %c0_7 = arith.constant 0 : index
    %c0_8 = arith.constant 0 : index
    %9 = vector.load %arg9[%c0_6, %c0_7, %c0_8] : memref<8x16x128xbf16, #tpu.memory_space<vmem>>, vector<8x16x128xbf16>
    tpu.vector_store %arg9[%c0_6, %c0_7, %c0_8], %8 {strides = array<i32>} : memref<8x16x128xbf16, #tpu.memory_space<vmem>>, vector<8x16x128xbf16>,
    %cst_9 = arith.constant 0.000000e+00 : f32
    %10 = vector.broadcast %cst_9 : f32 to vector<16x32xf32>
    %cst_10 = arith.constant 0.000000e+00 : f32
    %11 = vector.broadcast %cst_10 : f32 to vector<16x32xf32>
    %c0_i32 = arith.constant 0 : i32
    %12 = arith.index_cast %c0_i32 : i32 to index
    %c0_11 = arith.constant 0 : index
    %c0_12 = arith.constant 0 : index
    %13 = vector.load %arg9[%12, %c0_11, %c0_12] : memref<8x16x128xbf16, #tpu.memory_space<vmem>>, vector<1x16x128xbf16>
    %14 = vector.shape_cast %13 : vector<1x16x128xbf16> to vector<16x128xbf16>
    %15 = arith.extf %14 : vector<16x128xbf16> to vector<16x128xf32>
    %16 = arith.truncf %10 : vector<16x32xf32> to vector<16x32xbf16>
    %c0_13 = arith.constant 0 : index
    %c0_14 = arith.constant 0 : index
    %17 = vector.load %arg4[%c0_13, %c0_14] : memref<32x128xbf16, #tpu.memory_space<vmem>>, vector<32x128xbf16>
    %cst_15 = arith.constant dense<0.000000e+00> : vector<16x128xf32>
    %18 = tpu.matmul %16, %17, %cst_15 {dimension_numbers = #tpu.dot_dimension_numbers<[1], [0], [0], [1], [0, 0, 1, 1], [], []>} : vector<16x32xbf16>, vector<32x128xbf16>, vector<16x128xf32> -> vector<16x128xf32>
    %19 = arith.addf %15, %18 : vector<16x128xf32>
    %20 = vector.extract_strided_slice %19 {offsets = [0, 0], sizes = [16, 32], strides = [1, 1]} : vector<16x128xf32> to vector<16x32xf32>
    %21 = arith.negf %20 : vector<16x32xf32>
    %22 = math.exp %21 : vector<16x32xf32>
    %cst_16 = arith.constant 1.000000e+00 : f32
    %23 = vector.broadcast %cst_16 : f32 to vector<16x32xf32>
    %24 = arith.addf %23, %22 : vector<16x32xf32>
    %25 = arith.divf %23, %24 : vector<16x32xf32>
    %26 = vector.extract_strided_slice %19 {offsets = [0, 32], sizes = [16, 32], strides = [1, 1]} : vector<16x128xf32> to vector<16x32xf32>
    %27 = arith.negf %26 : vector<16x32xf32>
    %28 = math.exp %27 : vector<16x32xf32>
    %cst_17 = arith.constant 1.000000e+00 : f32
    %29 = vector.broadcast %cst_17 : f32 to vector<16x32xf32>
    %30 = arith.addf %29, %28 : vector<16x32xf32>
    %31 = arith.divf %29, %30 : vector<16x32xf32>
    %32 = vector.extract_strided_slice %19 {offsets = [0, 64], sizes = [16, 32], strides = [1, 1]} : vector<16x128xf32> to vector<16x32xf32>
    %33 = math.tanh %32 : vector<16x32xf32>
    %34 = vector.extract_strided_slice %19 {offsets = [0, 96], sizes = [16, 32], strides = [1, 1]} : vector<16x128xf32> to vector<16x32xf32>
    %35 = arith.negf %34 : vector<16x32xf32>
    %36 = math.exp %35 : vector<16x32xf32>
    %cst_18 = arith.constant 1.000000e+00 : f32
    %37 = vector.broadcast %cst_18 : f32 to vector<16x32xf32>
    %38 = arith.addf %37, %36 : vector<16x32xf32>
    %39 = arith.divf %37, %38 : vector<16x32xf32>
    %40 = arith.mulf %31, %11 : vector<16x32xf32>
    %41 = arith.mulf %25, %33 : vector<16x32xf32>
    %42 = arith.addf %40, %41 : vector<16x32xf32>
    %43 = math.tanh %42 : vector<16x32xf32>
    %44 = arith.mulf %39, %43 : vector<16x32xf32>
    %45 = arith.truncf %44 : vector<16x32xf32> to vector<16x32xbf16>
    %46 = arith.index_cast %c0_i32 : i32 to index
    %c0_19 = arith.constant 0 : index
    %c0_20 = arith.constant 0 : index
    %47 = vector.load %arg10[%46, %c0_19, %c0_20] : memref<8x16x32xbf16, #tpu.memory_space<vmem>>, vector<1x16x32xbf16>
    %48 = vector.shape_cast %47 : vector<1x16x32xbf16> to vector<16x32xbf16>
    %49 = vector.shape_cast %45 : vector<16x32xbf16> to vector<1x16x32xbf16>
    tpu.vector_store %arg10[%46, %c0_19, %c0_20], %49 {strides = array<i32>} : memref<8x16x32xbf16, #tpu.memory_space<vmem>>, vector<1x16x32xbf16>,
    %c1_i32 = arith.constant 1 : i32
    %50 = arith.index_cast %c1_i32 : i32 to index
    %c0_21 = arith.constant 0 : index
    %c0_22 = arith.constant 0 : index
    %51 = vector.load %arg9[%50, %c0_21, %c0_22] : memref<8x16x128xbf16, #tpu.memory_space<vmem>>, vector<1x16x128xbf16>
    %52 = vector.shape_cast %51 : vector<1x16x128xbf16> to vector<16x128xbf16>
    %53 = arith.extf %52 : vector<16x128xbf16> to vector<16x128xf32>
    %54 = arith.truncf %44 : vector<16x32xf32> to vector<16x32xbf16>
    %c0_23 = arith.constant 0 : index
    %c0_24 = arith.constant 0 : index
    %55 = vector.load %arg4[%c0_23, %c0_24] : memref<32x128xbf16, #tpu.memory_space<vmem>>, vector<32x128xbf16>
    %cst_25 = arith.constant dense<0.000000e+00> : vector<16x128xf32>
    %56 = tpu.matmul %54, %55, %cst_25 {dimension_numbers = #tpu.dot_dimension_numbers<[1], [0], [0], [1], [0, 0, 1, 1], [], []>} : vector<16x32xbf16>, vector<32x128xbf16>, vector<16x128xf32> -> vector<16x128xf32>
    %57 = arith.addf %53, %56 : vector<16x128xf32>
    %58 = vector.extract_strided_slice %57 {offsets = [0, 0], sizes = [16, 32], strides = [1, 1]} : vector<16x128xf32> to vector<16x32xf32>
    %59 = arith.negf %58 : vector<16x32xf32>
    %60 = math.exp %59 : vector<16x32xf32>
    %cst_26 = arith.constant 1.000000e+00 : f32
    %61 = vector.broadcast %cst_26 : f32 to vector<16x32xf32>
    %62 = arith.addf %61, %60 : vector<16x32xf32>
    %63 = arith.divf %61, %62 : vector<16x32xf32>
    %64 = vector.extract_strided_slice %57 {offsets = [0, 32], sizes = [16, 32], strides = [1, 1]} : vector<16x128xf32> to vector<16x32xf32>
    %65 = arith.negf %64 : vector<16x32xf32>
    %66 = math.exp %65 : vector<16x32xf32>
    %cst_27 = arith.constant 1.000000e+00 : f32
    %67 = vector.broadcast %cst_27 : f32 to vector<16x32xf32>
    %68 = arith.addf %67, %66 : vector<16x32xf32>
    %69 = arith.divf %67, %68 : vector<16x32xf32>
    %70 = vector.extract_strided_slice %57 {offsets = [0, 64], sizes = [16, 32], strides = [1, 1]} : vector<16x128xf32> to vector<16x32xf32>
    %71 = math.tanh %70 : vector<16x32xf32>
    %72 = vector.extract_strided_slice %57 {offsets = [0, 96], sizes = [16, 32], strides = [1, 1]} : vector<16x128xf32> to vector<16x32xf32>
    %73 = arith.negf %72 : vector<16x32xf32>
    %74 = math.exp %73 : vector<16x32xf32>
    %cst_28 = arith.constant 1.000000e+00 : f32
    %75 = vector.broadcast %cst_28 : f32 to vector<16x32xf32>
    %76 = arith.addf %75, %74 : vector<16x32xf32>
    %77 = arith.divf %75, %76 : vector<16x32xf32>
    %78 = arith.mulf %69, %42 : vector<16x32xf32>
    %79 = arith.mulf %63, %71 : vector<16x32xf32>
    %80 = arith.addf %78, %79 : vector<16x32xf32>
    %81 = math.tanh %80 : vector<16x32xf32>
    %82 = arith.mulf %77, %81 : vector<16x32xf32>
    %83 = arith.truncf %82 : vector<16x32xf32> to vector<16x32xbf16>
    %84 = arith.index_cast %c1_i32 : i32 to index
    %c0_29 = arith.constant 0 : index
    %c0_30 = arith.constant 0 : index
    %85 = vector.load %arg10[%84, %c0_29, %c0_30] : memref<8x16x32xbf16, #tpu.memory_space<vmem>>, vector<1x16x32xbf16>
    %86 = vector.shape_cast %85 : vector<1x16x32xbf16> to vector<16x32xbf16>
    %87 = vector.shape_cast %83 : vector<16x32xbf16> to vector<1x16x32xbf16>
    tpu.vector_store %arg10[%84, %c0_29, %c0_30], %87 {strides = array<i32>} : memref<8x16x32xbf16, #tpu.memory_space<vmem>>, vector<1x16x32xbf16>,
    %c2_i32 = arith.constant 2 : i32
    %88 = arith.index_cast %c2_i32 : i32 to index
    %c0_31 = arith.constant 0 : index
    %c0_32 = arith.constant 0 : index
    %89 = vector.load %arg9[%88, %c0_31, %c0_32] : memref<8x16x128xbf16, #tpu.memory_space<vmem>>, vector<1x16x128xbf16>
    %90 = vector.shape_cast %89 : vector<1x16x128xbf16> to vector<16x128xbf16>
    %91 = arith.extf %90 : vector<16x128xbf16> to vector<16x128xf32>
    %92 = arith.truncf %82 : vector<16x32xf32> to vector<16x32xbf16>
    %c0_33 = arith.constant 0 : index
    %c0_34 = arith.constant 0 : index
    %93 = vector.load %arg4[%c0_33, %c0_34] : memref<32x128xbf16, #tpu.memory_space<vmem>>, vector<32x128xbf16>
    %cst_35 = arith.constant dense<0.000000e+00> : vector<16x128xf32>
    %94 = tpu.matmul %92, %93, %cst_35 {dimension_numbers = #tpu.dot_dimension_numbers<[1], [0], [0], [1], [0, 0, 1, 1], [], []>} : vector<16x32xbf16>, vector<32x128xbf16>, vector<16x128xf32> -> vector<16x128xf32>
    %95 = arith.addf %91, %94 : vector<16x128xf32>
    %96 = vector.extract_strided_slice %95 {offsets = [0, 0], sizes = [16, 32], strides = [1, 1]} : vector<16x128xf32> to vector<16x32xf32>
    %97 = arith.negf %96 : vector<16x32xf32>
    %98 = math.exp %97 : vector<16x32xf32>
    %cst_36 = arith.constant 1.000000e+00 : f32
    %99 = vector.broadcast %cst_36 : f32 to vector<16x32xf32>
    %100 = arith.addf %99, %98 : vector<16x32xf32>
    %101 = arith.divf %99, %100 : vector<16x32xf32>
    %102 = vector.extract_strided_slice %95 {offsets = [0, 32], sizes = [16, 32], strides = [1, 1]} : vector<16x128xf32> to vector<16x32xf32>
    %103 = arith.negf %102 : vector<16x32xf32>
    %104 = math.exp %103 : vector<16x32xf32>
    %cst_37 = arith.constant 1.000000e+00 : f32
    %105 = vector.broadcast %cst_37 : f32 to vector<16x32xf32>
    %106 = arith.addf %105, %104 : vector<16x32xf32>
    %107 = arith.divf %105, %106 : vector<16x32xf32>
    %108 = vector.extract_strided_slice %95 {offsets = [0, 64], sizes = [16, 32], strides = [1, 1]} : vector<16x128xf32> to vector<16x32xf32>
    %109 = math.tanh %108 : vector<16x32xf32>
    %110 = vector.extract_strided_slice %95 {offsets = [0, 96], sizes = [16, 32], strides = [1, 1]} : vector<16x128xf32> to vector<16x32xf32>
    %111 = arith.negf %110 : vector<16x32xf32>
    %112 = math.exp %111 : vector<16x32xf32>
    %cst_38 = arith.constant 1.000000e+00 : f32
    %113 = vector.broadcast %cst_38 : f32 to vector<16x32xf32>
    %114 = arith.addf %113, %112 : vector<16x32xf32>
    %115 = arith.divf %113, %114 : vector<16x32xf32>
    %116 = arith.mulf %107, %80 : vector<16x32xf32>
    %117 = arith.mulf %101, %109 : vector<16x32xf32>
    %118 = arith.addf %116, %117 : vector<16x32xf32>
    %119 = math.tanh %118 : vector<16x32xf32>
    %120 = arith.mulf %115, %119 : vector<16x32xf32>
    %121 = arith.truncf %120 : vector<16x32xf32> to vector<16x32xbf16>
    %122 = arith.index_cast %c2_i32 : i32 to index
    %c0_39 = arith.constant 0 : index
    %c0_40 = arith.constant 0 : index
    %123 = vector.load %arg10[%122, %c0_39, %c0_40] : memref<8x16x32xbf16, #tpu.memory_space<vmem>>, vector<1x16x32xbf16>
    %124 = vector.shape_cast %123 : vector<1x16x32xbf16> to vector<16x32xbf16>
    %125 = vector.shape_cast %121 : vector<16x32xbf16> to vector<1x16x32xbf16>
    tpu.vector_store %arg10[%122, %c0_39, %c0_40], %125 {strides = array<i32>} : memref<8x16x32xbf16, #tpu.memory_space<vmem>>, vector<1x16x32xbf16>,
    %c3_i32 = arith.constant 3 : i32
    %126 = arith.index_cast %c3_i32 : i32 to index
    %c0_41 = arith.constant 0 : index
    %c0_42 = arith.constant 0 : index
    %127 = vector.load %arg9[%126, %c0_41, %c0_42] : memref<8x16x128xbf16, #tpu.memory_space<vmem>>, vector<1x16x128xbf16>
    %128 = vector.shape_cast %127 : vector<1x16x128xbf16> to vector<16x128xbf16>
    %129 = arith.extf %128 : vector<16x128xbf16> to vector<16x128xf32>
    %130 = arith.truncf %120 : vector<16x32xf32> to vector<16x32xbf16>
    %c0_43 = arith.constant 0 : index
    %c0_44 = arith.constant 0 : index
    %131 = vector.load %arg4[%c0_43, %c0_44] : memref<32x128xbf16, #tpu.memory_space<vmem>>, vector<32x128xbf16>
    %cst_45 = arith.constant dense<0.000000e+00> : vector<16x128xf32>
    %132 = tpu.matmul %130, %131, %cst_45 {dimension_numbers = #tpu.dot_dimension_numbers<[1], [0], [0], [1], [0, 0, 1, 1], [], []>} : vector<16x32xbf16>, vector<32x128xbf16>, vector<16x128xf32> -> vector<16x128xf32>
    %133 = arith.addf %129, %132 : vector<16x128xf32>
    %134 = vector.extract_strided_slice %133 {offsets = [0, 0], sizes = [16, 32], strides = [1, 1]} : vector<16x128xf32> to vector<16x32xf32>
    %135 = arith.negf %134 : vector<16x32xf32>
    %136 = math.exp %135 : vector<16x32xf32>
    %cst_46 = arith.constant 1.000000e+00 : f32
    %137 = vector.broadcast %cst_46 : f32 to vector<16x32xf32>
    %138 = arith.addf %137, %136 : vector<16x32xf32>
    %139 = arith.divf %137, %138 : vector<16x32xf32>
    %140 = vector.extract_strided_slice %133 {offsets = [0, 32], sizes = [16, 32], strides = [1, 1]} : vector<16x128xf32> to vector<16x32xf32>
    %141 = arith.negf %140 : vector<16x32xf32>
    %142 = math.exp %141 : vector<16x32xf32>
    %cst_47 = arith.constant 1.000000e+00 : f32
    %143 = vector.broadcast %cst_47 : f32 to vector<16x32xf32>
    %144 = arith.addf %143, %142 : vector<16x32xf32>
    %145 = arith.divf %143, %144 : vector<16x32xf32>
    %146 = vector.extract_strided_slice %133 {offsets = [0, 64], sizes = [16, 32], strides = [1, 1]} : vector<16x128xf32> to vector<16x32xf32>
    %147 = math.tanh %146 : vector<16x32xf32>
    %148 = vector.extract_strided_slice %133 {offsets = [0, 96], sizes = [16, 32], strides = [1, 1]} : vector<16x128xf32> to vector<16x32xf32>
    %149 = arith.negf %148 : vector<16x32xf32>
    %150 = math.exp %149 : vector<16x32xf32>
    %cst_48 = arith.constant 1.000000e+00 : f32
    %151 = vector.broadcast %cst_48 : f32 to vector<16x32xf32>
    %152 = arith.addf %151, %150 : vector<16x32xf32>
    %153 = arith.divf %151, %152 : vector<16x32xf32>
    %154 = arith.mulf %145, %118 : vector<16x32xf32>
    %155 = arith.mulf %139, %147 : vector<16x32xf32>
    %156 = arith.addf %154, %155 : vector<16x32xf32>
    %157 = math.tanh %156 : vector<16x32xf32>
    %158 = arith.mulf %153, %157 : vector<16x32xf32>
    %159 = arith.truncf %158 : vector<16x32xf32> to vector<16x32xbf16>
    %160 = arith.index_cast %c3_i32 : i32 to index
    %c0_49 = arith.constant 0 : index
    %c0_50 = arith.constant 0 : index
    %161 = vector.load %arg10[%160, %c0_49, %c0_50] : memref<8x16x32xbf16, #tpu.memory_space<vmem>>, vector<1x16x32xbf16>
    %162 = vector.shape_cast %161 : vector<1x16x32xbf16> to vector<16x32xbf16>
    %163 = vector.shape_cast %159 : vector<16x32xbf16> to vector<1x16x32xbf16>
    tpu.vector_store %arg10[%160, %c0_49, %c0_50], %163 {strides = array<i32>} : memref<8x16x32xbf16, #tpu.memory_space<vmem>>, vector<1x16x32xbf16>,
    %c4_i32 = arith.constant 4 : i32
    %164 = arith.index_cast %c4_i32 : i32 to index
    %c0_51 = arith.constant 0 : index
    %c0_52 = arith.constant 0 : index
    %165 = vector.load %arg9[%164, %c0_51, %c0_52] : memref<8x16x128xbf16, #tpu.memory_space<vmem>>, vector<1x16x128xbf16>
    %166 = vector.shape_cast %165 : vector<1x16x128xbf16> to vector<16x128xbf16>
    %167 = arith.extf %166 : vector<16x128xbf16> to vector<16x128xf32>
    %168 = arith.truncf %158 : vector<16x32xf32> to vector<16x32xbf16>
    %c0_53 = arith.constant 0 : index
    %c0_54 = arith.constant 0 : index
    %169 = vector.load %arg4[%c0_53, %c0_54] : memref<32x128xbf16, #tpu.memory_space<vmem>>, vector<32x128xbf16>
    %cst_55 = arith.constant dense<0.000000e+00> : vector<16x128xf32>
    %170 = tpu.matmul %168, %169, %cst_55 {dimension_numbers = #tpu.dot_dimension_numbers<[1], [0], [0], [1], [0, 0, 1, 1], [], []>} : vector<16x32xbf16>, vector<32x128xbf16>, vector<16x128xf32> -> vector<16x128xf32>
    %171 = arith.addf %167, %170 : vector<16x128xf32>
    %172 = vector.extract_strided_slice %171 {offsets = [0, 0], sizes = [16, 32], strides = [1, 1]} : vector<16x128xf32> to vector<16x32xf32>
    %173 = arith.negf %172 : vector<16x32xf32>
    %174 = math.exp %173 : vector<16x32xf32>
    %cst_56 = arith.constant 1.000000e+00 : f32
    %175 = vector.broadcast %cst_56 : f32 to vector<16x32xf32>
    %176 = arith.addf %175, %174 : vector<16x32xf32>
    %177 = arith.divf %175, %176 : vector<16x32xf32>
    %178 = vector.extract_strided_slice %171 {offsets = [0, 32], sizes = [16, 32], strides = [1, 1]} : vector<16x128xf32> to vector<16x32xf32>
    %179 = arith.negf %178 : vector<16x32xf32>
    %180 = math.exp %179 : vector<16x32xf32>
    %cst_57 = arith.constant 1.000000e+00 : f32
    %181 = vector.broadcast %cst_57 : f32 to vector<16x32xf32>
    %182 = arith.addf %181, %180 : vector<16x32xf32>
    %183 = arith.divf %181, %182 : vector<16x32xf32>
    %184 = vector.extract_strided_slice %171 {offsets = [0, 64], sizes = [16, 32], strides = [1, 1]} : vector<16x128xf32> to vector<16x32xf32>
    %185 = math.tanh %184 : vector<16x32xf32>
    %186 = vector.extract_strided_slice %171 {offsets = [0, 96], sizes = [16, 32], strides = [1, 1]} : vector<16x128xf32> to vector<16x32xf32>
    %187 = arith.negf %186 : vector<16x32xf32>
    %188 = math.exp %187 : vector<16x32xf32>
    %cst_58 = arith.constant 1.000000e+00 : f32
    %189 = vector.broadcast %cst_58 : f32 to vector<16x32xf32>
    %190 = arith.addf %189, %188 : vector<16x32xf32>
    %191 = arith.divf %189, %190 : vector<16x32xf32>
    %192 = arith.mulf %183, %156 : vector<16x32xf32>
    %193 = arith.mulf %177, %185 : vector<16x32xf32>
    %194 = arith.addf %192, %193 : vector<16x32xf32>
    %195 = math.tanh %194 : vector<16x32xf32>
    %196 = arith.mulf %191, %195 : vector<16x32xf32>
    %197 = arith.truncf %196 : vector<16x32xf32> to vector<16x32xbf16>
    %198 = arith.index_cast %c4_i32 : i32 to index
    %c0_59 = arith.constant 0 : index
    %c0_60 = arith.constant 0 : index
    %199 = vector.load %arg10[%198, %c0_59, %c0_60] : memref<8x16x32xbf16, #tpu.memory_space<vmem>>, vector<1x16x32xbf16>
    %200 = vector.shape_cast %199 : vector<1x16x32xbf16> to vector<16x32xbf16>
    %201 = vector.shape_cast %197 : vector<16x32xbf16> to vector<1x16x32xbf16>
    tpu.vector_store %arg10[%198, %c0_59, %c0_60], %201 {strides = array<i32>} : memref<8x16x32xbf16, #tpu.memory_space<vmem>>, vector<1x16x32xbf16>,
    %c5_i32 = arith.constant 5 : i32
    %202 = arith.index_cast %c5_i32 : i32 to index
    %c0_61 = arith.constant 0 : index
    %c0_62 = arith.constant 0 : index
    %203 = vector.load %arg9[%202, %c0_61, %c0_62] : memref<8x16x128xbf16, #tpu.memory_space<vmem>>, vector<1x16x128xbf16>
    %204 = vector.shape_cast %203 : vector<1x16x128xbf16> to vector<16x128xbf16>
    %205 = arith.extf %204 : vector<16x128xbf16> to vector<16x128xf32>
    %206 = arith.truncf %196 : vector<16x32xf32> to vector<16x32xbf16>
    %c0_63 = arith.constant 0 : index
    %c0_64 = arith.constant 0 : index
    %207 = vector.load %arg4[%c0_63, %c0_64] : memref<32x128xbf16, #tpu.memory_space<vmem>>, vector<32x128xbf16>
    %cst_65 = arith.constant dense<0.000000e+00> : vector<16x128xf32>
    %208 = tpu.matmul %206, %207, %cst_65 {dimension_numbers = #tpu.dot_dimension_numbers<[1], [0], [0], [1], [0, 0, 1, 1], [], []>} : vector<16x32xbf16>, vector<32x128xbf16>, vector<16x128xf32> -> vector<16x128xf32>
    %209 = arith.addf %205, %208 : vector<16x128xf32>
    %210 = vector.extract_strided_slice %209 {offsets = [0, 0], sizes = [16, 32], strides = [1, 1]} : vector<16x128xf32> to vector<16x32xf32>
    %211 = arith.negf %210 : vector<16x32xf32>
    %212 = math.exp %211 : vector<16x32xf32>
    %cst_66 = arith.constant 1.000000e+00 : f32
    %213 = vector.broadcast %cst_66 : f32 to vector<16x32xf32>
    %214 = arith.addf %213, %212 : vector<16x32xf32>
    %215 = arith.divf %213, %214 : vector<16x32xf32>
    %216 = vector.extract_strided_slice %209 {offsets = [0, 32], sizes = [16, 32], strides = [1, 1]} : vector<16x128xf32> to vector<16x32xf32>
    %217 = arith.negf %216 : vector<16x32xf32>
    %218 = math.exp %217 : vector<16x32xf32>
    %cst_67 = arith.constant 1.000000e+00 : f32
    %219 = vector.broadcast %cst_67 : f32 to vector<16x32xf32>
    %220 = arith.addf %219, %218 : vector<16x32xf32>
    %221 = arith.divf %219, %220 : vector<16x32xf32>
    %222 = vector.extract_strided_slice %209 {offsets = [0, 64], sizes = [16, 32], strides = [1, 1]} : vector<16x128xf32> to vector<16x32xf32>
    %223 = math.tanh %222 : vector<16x32xf32>
    %224 = vector.extract_strided_slice %209 {offsets = [0, 96], sizes = [16, 32], strides = [1, 1]} : vector<16x128xf32> to vector<16x32xf32>
    %225 = arith.negf %224 : vector<16x32xf32>
    %226 = math.exp %225 : vector<16x32xf32>
    %cst_68 = arith.constant 1.000000e+00 : f32
    %227 = vector.broadcast %cst_68 : f32 to vector<16x32xf32>
    %228 = arith.addf %227, %226 : vector<16x32xf32>
    %229 = arith.divf %227, %228 : vector<16x32xf32>
    %230 = arith.mulf %221, %194 : vector<16x32xf32>
    %231 = arith.mulf %215, %223 : vector<16x32xf32>
    %232 = arith.addf %230, %231 : vector<16x32xf32>
    %233 = math.tanh %232 : vector<16x32xf32>
    %234 = arith.mulf %229, %233 : vector<16x32xf32>
    %235 = arith.truncf %234 : vector<16x32xf32> to vector<16x32xbf16>
    %236 = arith.index_cast %c5_i32 : i32 to index
    %c0_69 = arith.constant 0 : index
    %c0_70 = arith.constant 0 : index
    %237 = vector.load %arg10[%236, %c0_69, %c0_70] : memref<8x16x32xbf16, #tpu.memory_space<vmem>>, vector<1x16x32xbf16>
    %238 = vector.shape_cast %237 : vector<1x16x32xbf16> to vector<16x32xbf16>
    %239 = vector.shape_cast %235 : vector<16x32xbf16> to vector<1x16x32xbf16>
    tpu.vector_store %arg10[%236, %c0_69, %c0_70], %239 {strides = array<i32>} : memref<8x16x32xbf16, #tpu.memory_space<vmem>>, vector<1x16x32xbf16>,
    %c6_i32 = arith.constant 6 : i32
    %240 = arith.index_cast %c6_i32 : i32 to index
    %c0_71 = arith.constant 0 : index
    %c0_72 = arith.constant 0 : index
    %241 = vector.load %arg9[%240, %c0_71, %c0_72] : memref<8x16x128xbf16, #tpu.memory_space<vmem>>, vector<1x16x128xbf16>
    %242 = vector.shape_cast %241 : vector<1x16x128xbf16> to vector<16x128xbf16>
    %243 = arith.extf %242 : vector<16x128xbf16> to vector<16x128xf32>
    %244 = arith.truncf %234 : vector<16x32xf32> to vector<16x32xbf16>
    %c0_73 = arith.constant 0 : index
    %c0_74 = arith.constant 0 : index
    %245 = vector.load %arg4[%c0_73, %c0_74] : memref<32x128xbf16, #tpu.memory_space<vmem>>, vector<32x128xbf16>
    %cst_75 = arith.constant dense<0.000000e+00> : vector<16x128xf32>
    %246 = tpu.matmul %244, %245, %cst_75 {dimension_numbers = #tpu.dot_dimension_numbers<[1], [0], [0], [1], [0, 0, 1, 1], [], []>} : vector<16x32xbf16>, vector<32x128xbf16>, vector<16x128xf32> -> vector<16x128xf32>
    %247 = arith.addf %243, %246 : vector<16x128xf32>
    %248 = vector.extract_strided_slice %247 {offsets = [0, 0], sizes = [16, 32], strides = [1, 1]} : vector<16x128xf32> to vector<16x32xf32>
    %249 = arith.negf %248 : vector<16x32xf32>
    %250 = math.exp %249 : vector<16x32xf32>
    %cst_76 = arith.constant 1.000000e+00 : f32
    %251 = vector.broadcast %cst_76 : f32 to vector<16x32xf32>
    %252 = arith.addf %251, %250 : vector<16x32xf32>
    %253 = arith.divf %251, %252 : vector<16x32xf32>
    %254 = vector.extract_strided_slice %247 {offsets = [0, 32], sizes = [16, 32], strides = [1, 1]} : vector<16x128xf32> to vector<16x32xf32>
    %255 = arith.negf %254 : vector<16x32xf32>
    %256 = math.exp %255 : vector<16x32xf32>
    %cst_77 = arith.constant 1.000000e+00 : f32
    %257 = vector.broadcast %cst_77 : f32 to vector<16x32xf32>
    %258 = arith.addf %257, %256 : vector<16x32xf32>
    %259 = arith.divf %257, %258 : vector<16x32xf32>
    %260 = vector.extract_strided_slice %247 {offsets = [0, 64], sizes = [16, 32], strides = [1, 1]} : vector<16x128xf32> to vector<16x32xf32>
    %261 = math.tanh %260 : vector<16x32xf32>
    %262 = vector.extract_strided_slice %247 {offsets = [0, 96], sizes = [16, 32], strides = [1, 1]} : vector<16x128xf32> to vector<16x32xf32>
    %263 = arith.negf %262 : vector<16x32xf32>
    %264 = math.exp %263 : vector<16x32xf32>
    %cst_78 = arith.constant 1.000000e+00 : f32
    %265 = vector.broadcast %cst_78 : f32 to vector<16x32xf32>
    %266 = arith.addf %265, %264 : vector<16x32xf32>
    %267 = arith.divf %265, %266 : vector<16x32xf32>
    %268 = arith.mulf %259, %232 : vector<16x32xf32>
    %269 = arith.mulf %253, %261 : vector<16x32xf32>
    %270 = arith.addf %268, %269 : vector<16x32xf32>
    %271 = math.tanh %270 : vector<16x32xf32>
    %272 = arith.mulf %267, %271 : vector<16x32xf32>
    %273 = arith.truncf %272 : vector<16x32xf32> to vector<16x32xbf16>
    %274 = arith.index_cast %c6_i32 : i32 to index
    %c0_79 = arith.constant 0 : index
    %c0_80 = arith.constant 0 : index
    %275 = vector.load %arg10[%274, %c0_79, %c0_80] : memref<8x16x32xbf16, #tpu.memory_space<vmem>>, vector<1x16x32xbf16>
    %276 = vector.shape_cast %275 : vector<1x16x32xbf16> to vector<16x32xbf16>
    %277 = vector.shape_cast %273 : vector<16x32xbf16> to vector<1x16x32xbf16>
    tpu.vector_store %arg10[%274, %c0_79, %c0_80], %277 {strides = array<i32>} : memref<8x16x32xbf16, #tpu.memory_space<vmem>>, vector<1x16x32xbf16>,
    %c7_i32 = arith.constant 7 : i32
    %278 = arith.index_cast %c7_i32 : i32 to index
    %c0_81 = arith.constant 0 : index
    %c0_82 = arith.constant 0 : index
    %279 = vector.load %arg9[%278, %c0_81, %c0_82] : memref<8x16x128xbf16, #tpu.memory_space<vmem>>, vector<1x16x128xbf16>
    %280 = vector.shape_cast %279 : vector<1x16x128xbf16> to vector<16x128xbf16>
    %281 = arith.extf %280 : vector<16x128xbf16> to vector<16x128xf32>
    %282 = arith.truncf %272 : vector<16x32xf32> to vector<16x32xbf16>
    %c0_83 = arith.constant 0 : index
    %c0_84 = arith.constant 0 : index
    %283 = vector.load %arg4[%c0_83, %c0_84] : memref<32x128xbf16, #tpu.memory_space<vmem>>, vector<32x128xbf16>
    %cst_85 = arith.constant dense<0.000000e+00> : vector<16x128xf32>
    %284 = tpu.matmul %282, %283, %cst_85 {dimension_numbers = #tpu.dot_dimension_numbers<[1], [0], [0], [1], [0, 0, 1, 1], [], []>} : vector<16x32xbf16>, vector<32x128xbf16>, vector<16x128xf32> -> vector<16x128xf32>
    %285 = arith.addf %281, %284 : vector<16x128xf32>
    %286 = vector.extract_strided_slice %285 {offsets = [0, 0], sizes = [16, 32], strides = [1, 1]} : vector<16x128xf32> to vector<16x32xf32>
    %287 = arith.negf %286 : vector<16x32xf32>
    %288 = math.exp %287 : vector<16x32xf32>
    %cst_86 = arith.constant 1.000000e+00 : f32
    %289 = vector.broadcast %cst_86 : f32 to vector<16x32xf32>
    %290 = arith.addf %289, %288 : vector<16x32xf32>
    %291 = arith.divf %289, %290 : vector<16x32xf32>
    %292 = vector.extract_strided_slice %285 {offsets = [0, 32], sizes = [16, 32], strides = [1, 1]} : vector<16x128xf32> to vector<16x32xf32>
    %293 = arith.negf %292 : vector<16x32xf32>
    %294 = math.exp %293 : vector<16x32xf32>
    %cst_87 = arith.constant 1.000000e+00 : f32
    %295 = vector.broadcast %cst_87 : f32 to vector<16x32xf32>
    %296 = arith.addf %295, %294 : vector<16x32xf32>
    %297 = arith.divf %295, %296 : vector<16x32xf32>
    %298 = vector.extract_strided_slice %285 {offsets = [0, 64], sizes = [16, 32], strides = [1, 1]} : vector<16x128xf32> to vector<16x32xf32>
    %299 = math.tanh %298 : vector<16x32xf32>
    %300 = vector.extract_strided_slice %285 {offsets = [0, 96], sizes = [16, 32], strides = [1, 1]} : vector<16x128xf32> to vector<16x32xf32>
    %301 = arith.negf %300 : vector<16x32xf32>
    %302 = math.exp %301 : vector<16x32xf32>
    %cst_88 = arith.constant 1.000000e+00 : f32
    %303 = vector.broadcast %cst_88 : f32 to vector<16x32xf32>
    %304 = arith.addf %303, %302 : vector<16x32xf32>
    %305 = arith.divf %303, %304 : vector<16x32xf32>
    %306 = arith.mulf %297, %270 : vector<16x32xf32>
    %307 = arith.mulf %291, %299 : vector<16x32xf32>
    %308 = arith.addf %306, %307 : vector<16x32xf32>
    %309 = math.tanh %308 : vector<16x32xf32>
    %310 = arith.mulf %305, %309 : vector<16x32xf32>
    %311 = arith.truncf %310 : vector<16x32xf32> to vector<16x32xbf16>
    %312 = arith.index_cast %c7_i32 : i32 to index
    %c0_89 = arith.constant 0 : index
    %c0_90 = arith.constant 0 : index
    %313 = vector.load %arg10[%312, %c0_89, %c0_90] : memref<8x16x32xbf16, #tpu.memory_space<vmem>>, vector<1x16x32xbf16>
    %314 = vector.shape_cast %313 : vector<1x16x32xbf16> to vector<16x32xbf16>
    %315 = vector.shape_cast %311 : vector<16x32xbf16> to vector<1x16x32xbf16>
    tpu.vector_store %arg10[%312, %c0_89, %c0_90], %315 {strides = array<i32>} : memref<8x16x32xbf16, #tpu.memory_space<vmem>>, vector<1x16x32xbf16>,
    %c8_i32 = arith.constant 8 : i32
    %316 = tpu.iota {dimensions = array<i32: 0>} : vector<8x16x32xi32>
    %c0_91 = arith.constant 0 : index
    %c0_92 = arith.constant 0 : index
    %317 = vector.load %arg2[%c0_91, %c0_92] : memref<16x1xi32, #tpu.memory_space<vmem>>, vector<16x1xi32>
    %318 = vector.shape_cast %317 : vector<16x1xi32> to vector<1x16x1xi32>
    %319 = vector.broadcast %318 : vector<1x16x1xi32> to vector<8x16x32xi32>
    %320 = arith.cmpi slt, %316, %319 : vector<8x16x32xi32>
    %c0_93 = arith.constant 0 : index
    %c0_94 = arith.constant 0 : index
    %c0_95 = arith.constant 0 : index
    %321 = vector.load %arg10[%c0_93, %c0_94, %c0_95] : memref<8x16x32xbf16, #tpu.memory_space<vmem>>, vector<8x16x32xbf16>
    %c0_i32_96 = arith.constant 0 : i32
    %322 = arith.sitofp %c0_i32_96 : i32 to bf16
    %323 = vector.broadcast %322 : bf16 to vector<8x16x32xbf16>
    %324 = arith.select %320, %321, %323 : vector<8x16x32xi1>, vector<8x16x32xbf16>
    %325 = vector.shape_cast %324 : vector<8x16x32xbf16> to vector<128x32xbf16>
    %c0_97 = arith.constant 0 : index
    %c0_98 = arith.constant 0 : index
    %326 = vector.load %arg6[%c0_97, %c0_98] : memref<32x128xbf16, #tpu.memory_space<vmem>>, vector<32x128xbf16>
    %cst_99 = arith.constant dense<0.000000e+00> : vector<128x128xf32>
    %327 = tpu.matmul %325, %326, %cst_99 {dimension_numbers = #tpu.dot_dimension_numbers<[1], [0], [0], [1], [0, 0, 1, 1], [], []>} : vector<128x32xbf16>, vector<32x128xbf16>, vector<128x128xf32> -> vector<128x128xf32>
    %c0_100 = arith.constant 0 : index
    %c0_101 = arith.constant 0 : index
    %328 = vector.load %arg7[%c0_100, %c0_101] : memref<1x128xf32, #tpu.memory_space<vmem>>, vector<1x128xf32>
    %329 = vector.broadcast %328 : vector<1x128xf32> to vector<128x128xf32>
    %330 = arith.addf %327, %329 : vector<128x128xf32>
    %331 = vector.shape_cast %330 : vector<128x128xf32> to vector<8x16x128xf32>
    %cst_102 = arith.constant dense<0xFF800000> : vector<16x128xf32>
    %332 = vector.multi_reduction <maximumf>, %331, %cst_102 [0] : vector<8x16x128xf32> to vector<16x128xf32>
    %333 = vector.shape_cast %332 : vector<16x128xf32> to vector<1x16x128xf32>
    %334 = vector.broadcast %333 : vector<1x16x128xf32> to vector<8x16x128xf32>
    %335 = arith.subf %331, %334 : vector<8x16x128xf32>
    %336 = math.exp %335 : vector<8x16x128xf32>
    %cst_103 = arith.constant dense<0.000000e+00> : vector<16x128xf32>
    %337 = vector.multi_reduction <add>, %336, %cst_103 [0] : vector<8x16x128xf32> to vector<16x128xf32>
    %338 = vector.shape_cast %337 : vector<16x128xf32> to vector<1x16x128xf32>
    %339 = math.log %338 : vector<1x16x128xf32>
    %340 = vector.broadcast %339 : vector<1x16x128xf32> to vector<8x16x128xf32>
    %341 = arith.subf %335, %340 : vector<8x16x128xf32>
    %c0_104 = arith.constant 0 : index
    %c0_105 = arith.constant 0 : index
    %c0_106 = arith.constant 0 : index
    %342 = vector.load %arg8[%c0_104, %c0_105, %c0_106] : memref<8x16x128xf32, #tpu.memory_space<vmem>>, vector<8x16x128xf32>
    tpu.vector_store %arg8[%c0_104, %c0_105, %c0_106], %341 {strides = array<i32>} : memref<8x16x128xf32, #tpu.memory_space<vmem>>, vector<8x16x128xf32>,
    return
  }
  func.func @transform_0(%arg0: i32) -> (i32, i32, i32) {
    %c0_i32 = arith.constant 0 : i32
    %c0_i32_0 = arith.constant 0 : i32
    %c0_i32_1 = arith.constant 0 : i32
    return %c0_i32, %arg0, %c0_i32_0 : i32, i32, i32
  }
  func.func @transform_1(%arg0: i32) -> (i32, i32) {
    %c0_i32 = arith.constant 0 : i32
    %c0_i32_0 = arith.constant 0 : i32
    return %arg0, %c0_i32 : i32, i32
  }
  func.func @transform_2(%arg0: i32) -> (i32, i32) {
    %c0_i32 = arith.constant 0 : i32
    %c0_i32_0 = arith.constant 0 : i32
    %c0_i32_1 = arith.constant 0 : i32
    return %c0_i32, %c0_i32_0 : i32, i32
  }
  func.func @transform_3(%arg0: i32) -> (i32, i32) {
    %c0_i32 = arith.constant 0 : i32
    %c0_i32_0 = arith.constant 0 : i32
    %c0_i32_1 = arith.constant 0 : i32
    return %c0_i32, %c0_i32_0 : i32, i32
  }
  func.func @transform_4(%arg0: i32) -> (i32, i32) {
    %c0_i32 = arith.constant 0 : i32
    %c0_i32_0 = arith.constant 0 : i32
    %c0_i32_1 = arith.constant 0 : i32
    return %c0_i32, %c0_i32_0 : i32, i32
  }
  func.func @transform_5(%arg0: i32) -> (i32, i32) {
    %c0_i32 = arith.constant 0 : i32
    %c0_i32_0 = arith.constant 0 : i32
    %c0_i32_1 = arith.constant 0 : i32
    return %c0_i32, %c0_i32_0 : i32, i32
  }
  func.func @transform_6(%arg0: i32) -> (i32, i32) {
    %c0_i32 = arith.constant 0 : i32
    %c0_i32_0 = arith.constant 0 : i32
    %c0_i32_1 = arith.constant 0 : i32
    return %c0_i32, %c0_i32_0 : i32, i32
  }
  func.func @transform_7(%arg0: i32) -> (i32, i32, i32) {
    %c0_i32 = arith.constant 0 : i32
    %c0_i32_0 = arith.constant 0 : i32
    %c0_i32_1 = arith.constant 0 : i32
    return %c0_i32, %arg0, %c0_i32_0 : i32, i32, i32
  }
}

</mosaic_0001>

<bundles_post_ra>
// kernel: tpu_custom_call.1
= control target key start
LH: loop header
LB: loop body
LE: loop exit
PB: predicated region body
PF: predicated region fallthrough
CT: control target
= control target key end

     0   :  { %12 = vsyncpa [#allocation5], 0  ;;  %s2600_s0 = inlined_call_operand.hbm [shape: bf16[8,16,16], index: 0, kind: input, shape index: {}]   ;;  %s2601_s1 = inlined_call_operand.vmem [shape: s32[16,1], index: 1, kind: input, shape index: {}]   ;;  %s2602_s2 = inlined_call_operand.hbm [shape: bf16[16,128], index: 2, kind: input, shape index: {}]   ;;  %s2603_s3 = inlined_call_operand.vmem [shape: bf16[32,128], index: 3, kind: input, shape index: {}]   ;;  %s2604_s4 = inlined_call_operand.hbm [shape: f32[1,128], index: 4, kind: input, shape index: {}]   ;;  %s2605_s5 = inlined_call_operand.vmem [shape: bf16[32,128], index: 5, kind: input, shape index: {}]   ;;  %s2606_s6 = inlined_call_operand.vmem [shape: f32[1,128], index: 6, kind: input, shape index: {}]   ;;  %s2607_s7 = inlined_call_operand.hbm [shape: f32[8,16,128], index: 7, kind: output, shape index: {}]  }
   0x1   :  { %13 = vsyncpa [#allocation8], 0 }
   0x2   :  { %14 = vsyncpa [#allocation6], 0  ;;  %s2145_s24 = smov [#allocation7]   ;;  %s2146_s26 = smov [#allocation4]  }
   0x3   :  { %s34_s25 = sshll.u32 %s2145_s24, 4  ;;  %s20_s27 = sshll.u32 %s2146_s26, 4  ;;  %s35_s25 = int_to_ptr.vmem [resolvable:$true] %s34_s25  ;;  %s2197_s27 = int_to_ptr.vmem [resolvable:$true] %s20_s27 }
   0x4   :  { %s2051_s30 = scalar_lea.hbm %s2602_s2, 128 }
   0x5   :  { %p2052_p0 = scmp.ne.s32.totalorder %s2602_s2, %s2051_s30  ;;  %p2055_p1 = scmp.lt.u32.totalorder %s2051_s30, %s2602_s2 }
   0x7   :  { %p2057_p2 = pnand %p2055_p1, %p2052_p0 }
   0x9   :  { %2060 = shalt.err (!%p2057_p2)
}
   0xa   :  { %s2061_s12 = scalar_lea.vmem %s35_s25, 128  ;;  %p2066_p4 = scmp.lt.s32.totalorder %s35_s25, %s35_s25 }
   0xb   :  { %p2062_p3 = scmp.ne.s32.totalorder %s35_s25, %s2061_s12  ;;  %p2067_p5 = scmp.lt.s32.totalorder %s2061_s12, %s2061_s12 }
   0xd   :  { %p2068_p6 = por %p2067_p5, %p2066_p4 }
   0xf   :  { %p2069_p7 = pnand %p2068_p6, %p2062_p3 }
  0x11   :  { %2072 = shalt.err (!%p2069_p7)
}
  0x12   :  { %s2147_s13 = smov 64   ;;  %s2148_s14 = smov 4  }
  0x13   :  { %40 = dma.hbm_to_vmem [thread:$0]  %s2602_s2, 128, %s35_s25, [#allocation8], %s2147_s13, %s2147_s13, %s2148_s14  }
  0x14   :  { %s2073_s19 = scalar_lea.hbm %s2600_s0, 1024 }
  0x15   :  { %p2074_p8 = scmp.ne.s32.totalorder %s2600_s0, %s2073_s19  ;;  %p2077_p9 = scmp.lt.u32.totalorder %s2073_s19, %s2600_s0 }
  0x17   :  { %p2079_p10 = pnand %p2077_p9, %p2074_p8 }
  0x19   :  { %2082 = shalt.err (!%p2079_p10)
}
  0x1a   :  { %s2083_s24 = scalar_lea.vmem %s2197_s27, 1024  ;;  %p2088_p12 = scmp.lt.s32.totalorder %s2197_s27, %s2197_s27 }
  0x1b   :  { %p2084_p11 = scmp.ne.s32.totalorder %s2197_s27, %s2083_s24  ;;  %p2089_p13 = scmp.lt.s32.totalorder %s2083_s24, %s2083_s24 }
  0x1d   :  { %p2090_p0 = por %p2089_p13, %p2088_p12 }
  0x1f   :  { %p2091_p1 = pnand %p2090_p0, %p2084_p11 }
  0x21   :  { %2094 = shalt.err (!%p2091_p1)
}
  0x22   :  { %26 = dma.hbm_to_vmem [thread:$0]  %s2600_s0, 1024, %s2197_s27, [#allocation5], %s2147_s13, %s2147_s13, %s2148_s14  }
  0x23   :  { %s2149_s26 = smov [#allocation9]   ;;  %s2095_s8 = scalar_lea.hbm %s2604_s4, 16 }
  0x24   :  { %s49_s28 = sshll.u32 %s2149_s26, 4  ;;  %p2096_p2 = scmp.ne.s32.totalorder %s2604_s4, %s2095_s8  ;;  %s50_s28 = int_to_ptr.vmem [resolvable:$true] %s49_s28 }
  0x25   :  { %p2099_p3 = scmp.lt.u32.totalorder %s2095_s8, %s2604_s4 }
  0x27   :  { %p2101_p4 = pnand %p2099_p3, %p2096_p2 }
  0x29   :  { %2104 = shalt.err (!%p2101_p4)
}
  0x2a   :  { %s2105_s15 = scalar_lea.vmem %s50_s28, 16  ;;  %s2109_s0 = scalar_lea.vmem %s50_s28, 32 }
  0x2b   :  { %p2106_p5 = scmp.ne.s32.totalorder %s50_s28, %s2105_s15  ;;  %p2110_p6 = scmp.lt.s32.totalorder %s50_s28, %s50_s28 }
  0x2c   :  { %p2111_p7 = scmp.lt.s32.totalorder %s2109_s0, %s2105_s15 }
  0x2e   :  { %p2112_p8 = por %p2111_p7, %p2110_p6 }
  0x30   :  { %p2113_p9 = pnand %p2112_p8, %p2106_p5 }
  0x32   :  { %2116 = shalt.err (!%p2113_p9)
}
  0x33   :  { %52 = dma.hbm_to_vmem [thread:$0]  %s2604_s4, 16, %s50_s28, [#allocation8]  }
  0x34   :  { %2139 = dma.done.wait [#allocation5], 1024  }
  0x35   :  { %2140 = vsyncadd [#allocation5], 4294966272 }
  0x36   :  { %2141 = dma.done.wait [#allocation8], 144  }
  0x37   :  { %2142 = vsyncadd [#allocation8], 4294967152  ;;  %v2150_v0 = vmov 0   ;;  %v1860_v1 = vld [vmem:[#allocation7] sm:$0xff]   ;;  %vm140_vm0 = vcmask 130048   ;;  %v1862_v3 = vld [vmem:[#allocation4 + $0x28] sm:$0xff]  }
  0x38   :  { %1859 = vset.pattern.permute.xlu0 %v2150_v0  ;;  %1858 = vset.pattern.permute.xlu1 %v2150_v0  ;;  %v1861_v2 = vld [vmem:[#allocation4 + $0x20] sm:$0xff]   ;;  %v2151_v5 = vmov 0.0   ;;  %v1865_v7 = vld [vmem:[#allocation4 + $0x8] sm:$0xff]   ;;  %v1866_v8 = vld [vmem:[#allocation4 + $0x30] sm:$0xff]   ;;  %vm2152_vm1 = vmmov 0   ;;  %s2153_s19 = smov 32  }
  0x39   :  { %1844 = vmatprep.subr.bf16.mxu1 %v1860_v1  ;;  %1742 = vmatprep.subr.bf16.mxu0 %v1860_v1  ;;  %v1863_v4 = vld [vmem:[%s2603_s3] sm:$0xff]   ;;  %v1868_v9 = vld [vmem:[%s2603_s3 + $0x8] sm:$0xff]   ;;  %v1867_v10 = vld [vmem:[#allocation4 + $0x38] sm:$0xff]   ;;  %vm297_vm2 = vcmask 261120  }
  0x3a   :  { %1845 = vmatpush3.bf16.msra.mxu1 %v1860_v1  ;;  %1752 = vmatprep.mubr.msk.bf16.mxu1 %vm140_vm0, %v1861_v2  ;;  %v1864_v6 = vld [vmem:[#allocation4] sm:$0xff]   ;;  %v2267_v11 = vld [vmem:[#allocation9] ss:$0 sm:$0xff] }
  0x3b   :  { %1760 = vmatprep.subr.bf16.mxu1 %v2151_v5  ;;  %1743 = vmatpush3.bf16.msra.mxu0 %v1860_v1 }
  0x3c   :  { %1792 = vmatprep.subr.bf16.mxu0 %v2151_v5  ;;  %1744 = vmatprep.mubr.msk.bf16.mxu0 %vm140_vm0, %v1864_v6 }
  0x3d   :  { %1753 = vmatmul.mubr.msk.bf16.vlgmr.msra.gmra.mrb[0].mxu1 %vm140_vm0, %v1862_v3 }
  0x3e   :  { %1761 = vmatpush3.bf16.msra.mxu1 %v1863_v4  ;;  %1745 = vmatmul.mubr.msk.bf16.vlgmr.msra.gmra.mrb[0].mxu0 %vm140_vm0, %v1865_v7 }
  0x3f   :  { %1756 = vmatprep.mubr.msk.bf16.mxu1 %vm140_vm0, %v1866_v8  ;;  %1762 = vmatprep.subr.bf16.mxu1 %v2151_v5  ;;  %v1869_v8 = vld [vmem:[%s2603_s3] sm:$0xff]  }
  0x42   :  { %1763 = vmatpush3.bf16.msra.mxu1 %v1868_v9  ;;  %v1870_v9 = vld [vmem:[%s2603_s3 + $0x8] sm:$0xff]  }
  0x43   :  { %1768 = vmatprep.subr.bf16.mxu1 %v2151_v5 }
  0x45   :  { %1757 = vmatmul.mubr.msk.bf16.gmra.mrb[4].mxu1 %vm140_vm0, %v1867_v10 }
  0x46   :  { %1764 = vmatprep.mubr.msk.bf16.mxu1 %vm2152_vm1, %v2151_v5 }
  0x4d   :  { %1765 = vmatmul.mubr.bf16.vlgmr.msra.gmra.mrb[8].mxu1 %v2150_v0 }
  0x4e   :  { %1772 = vmatprep.mubr.msk.bf16.mxu1 %vm2152_vm1, %v2151_v5  ;;  %1769 = vmatpush3.bf16.msra.mxu1 %v1869_v8 }
  0x4f   :  { %1770 = vmatprep.subr.bf16.mxu1 %v2151_v5 }
  0x52   :  { %1771 = vmatpush3.bf16.msra.mxu1 %v1870_v9 }
  0x53   :  { %1776 = vmatprep.subr.bf16.mxu1 %v2151_v5 }
 0x110   :  { %v1754_v12 = vpop.f32.mrb[0].mxu1 }
 0x111   :  { %v231_v13 = vpop.f32.mrb[1].mxu1  ;;  %v1746_v14 = vpop.f32.mrb[0].mxu0  ;;  %v240_v18 = vadd.f32 %v1754_v12, %v2267_v11 }
 0x112   :  { %v1755_v15 = vpop.f32.mrb[2].mxu1  ;;  %v208_v16 = vadd.f32 %v1746_v14, %v2267_v11  ;;  %v199_v17 = vpop.f32.mrb[1].mxu0  ;;  %v232_v23 = vadd.f32 %v2267_v11, %v231_v13 }
 0x113   :  { %v243_v19 = vadd.f32 %v1755_v15, %v2267_v11  ;;  %v234_v20 = vpop.f32.mrb[3].mxu1  ;;  %v200_v21 = vadd.f32 %v2267_v11, %v199_v17  ;;  %v1747_v22 = vpop.f32.mrb[2].mxu0 }
 0x114   :  { %v235_v24 = vadd.f32 %v2267_v11, %v234_v20  ;;  %v211_v25 = vadd.f32 %v1747_v22, %v2267_v11  ;;  %v202_v26 = vpop.f32.mrb[3].mxu0 }
 0x115   :  { %v2276_v27 = vpack.c.bf16 %v243_v19, %v240_v18  ;;  %v203_v28 = vadd.f32 %v2267_v11, %v202_v26 }
 0x116   :  { %v2279_v29 = vpack.c.bf16 %v235_v24, %v232_v23  ;;  %v2281_v30 = vpack.c.bf16 %v211_v25, %v208_v16 }
 0x117   :  { %v262_v31 = vpack.c.bf16 %v203_v28, %v200_v21 }
 0x118   :  { %v1758_v32 = vpop.f32.mrb[4].mxu1  ;;  %v400_v19 = vunpack.c.l.bf16 %v2281_v30  ;;  %v401_v23 = vunpack.c.h.bf16 %v2281_v30 }
 0x119   :  { %v247_v33 = vpop.f32.mrb[5].mxu1  ;;  %v256_v35 = vadd.f32 %v1758_v32, %v2267_v11  ;;  %v279_v42 = vunpack.c.l.bf16 %v262_v31  ;;  %v280_v46 = vunpack.c.h.bf16 %v262_v31 }
 0x11a   :  { %v1759_v34 = vpop.f32.mrb[6].mxu1  ;;  %v248_v38 = vadd.f32 %v2267_v11, %v247_v33 }
 0x11b   :  { %v259_v36 = vadd.f32 %v1759_v34, %v2267_v11  ;;  %v250_v37 = vpop.f32.mrb[7].mxu1 }
 0x11c   :  { %v251_v39 = vadd.f32 %v2267_v11, %v250_v37 }
 0x11d   :  { %v2287_v40 = vpack.c.bf16 %v259_v36, %v256_v35 }
 0x11e   :  { %v2289_v41 = vpack.c.bf16 %v251_v39, %v248_v38 }
 0x120   :  { %v335_v43 = vpop.f32.mrb[8].mxu1 }
 0x121   :  { %v342_v44 = vadd.f32 %v335_v43, %v279_v42  ;;  %v1766_v45 = vpop.f32.mrb[9].mxu1 }
 0x122   :  { %v338_v47 = vpop.f32.mrb[10].mxu1 }
 0x123   :  { %v343_v48 = vadd.f32 %v338_v47, %v280_v46  ;;  %v1767_v49 = vpop.f32.mrb[11].mxu1  ;;  %1887 = vtanh.f32 %v342_v44  ;;  %v1643_v52 = vmul.f32 -1.442695, %v342_v44 }
 0x125   :  { %1889 = vtanh.f32 %v343_v48  ;;  %v1644_v53 = vmul.f32 -1.442695, %v343_v48 }
 0x126   :  { %1891 = vpow2.f32 %v1643_v52  ;;  %v1872_v52 = vld [vmem:[#allocation4 + $0x18] sm:$0xff]  }
 0x127   :  { %1893 = vpow2.f32 %v1644_v53  ;;  %v1873_v53 = vld [vmem:[%s2603_s3] sm:$0xff]  }
 0x12d   :  { %v1888_v50 = vpop.eup %1887 }
 0x12e   :  { %362 = vrot.lane.b32.xlu0 %v1888_v50, %s2147_s13 }
 0x12f   :  { %v1890_v51 = vpop.eup %1889 }
 0x130   :  { %v1892_v54 = vpop.eup %1891 }
 0x131   :  { %v350_v55 = vadd.f32 1.0, %v1892_v54  ;;  %v1894_v56 = vpop.eup %1893  ;;  %v1874_v54 = vld [vmem:[%s2603_s3 + $0x8] sm:$0xff]  }
 0x132   :  { %364 = vrot.lane.b32.xlu0 %v1890_v51, %s2147_s13  ;;  %v351_v57 = vadd.f32 1.0, %v1894_v56  ;;  %v1871_v51 = vld [vmem:[#allocation4 + $0x10] sm:$0xff]  }
 0x133   :  { %1895 = vrcp.f32 %v350_v55  ;;  %1748 = vmatprep.mubr.msk.bf16.mxu0 %vm140_vm0, %v1871_v51 }
 0x134   :  { %1897 = vrcp.f32 %v351_v57  ;;  %1749 = vmatmul.mubr.msk.bf16.gmra.mrb[4].mxu0 %vm140_vm0, %v1872_v52 }
 0x135   :  { %1796 = vmatprep.mubr.msk.bf16.mxu0 %vm2152_vm1, %v2151_v5 }
 0x13d   :  { %v1896_v58 = vpop.eup %1895 }
 0x13e   :  { %v1898_v61 = vpop.eup %1897  ;;  %v358_v1 = vmul.f32 0.0, %v1896_v58 }
 0x13f   :  { %v359_v4 = vmul.f32 0.0, %v1898_v61 }
 0x1a0   :  { %v363_v59 = vpop.permute.xlu0 %362 }
 0x1a1   :  { %v368_v60 = vmul.f32 %v1896_v58, %v363_v59 }
 0x1a3   :  { %372 = vrot.lane.b32.xlu1 %v368_v60, %s2153_s19 }
 0x1a4   :  { %v365_v62 = vpop.permute.xlu0 %364 }
 0x1a5   :  { %v369_v63 = vmul.f32 %v1898_v61, %v365_v62 }
 0x1a7   :  { %374 = vrot.lane.b32.xlu1 %v369_v63, %s2153_s19 }
 0x207   :  { %v1750_v62 = vpop.f32.mrb[4].mxu0 }
 0x208   :  { %v224_v63 = vadd.f32 %v1750_v62, %v2267_v11 }
 0x215   :  { %v373_v2 = vpop.permute.xlu1 %372 }
 0x216   :  { %v378_v3 = vadd.f32 %v373_v2, %v358_v1  ;;  %v215_v1 = vpop.f32.mrb[5].mxu0 }
 0x217   :  { %v216_v2 = vadd.f32 %v2267_v11, %v215_v1 }
 0x218   :  { %1899 = vtanh.f32 %v378_v3 }
 0x219   :  { %v375_v6 = vpop.permute.xlu1 %374 }
 0x21a   :  { %v379_v7 = vadd.f32 %v375_v6, %v359_v4 }
 0x21c   :  { %1901 = vtanh.f32 %v379_v7 }
 0x222   :  { %v1900_v10 = vpop.eup %1899 }
 0x223   :  { %384 = vrot.lane.b32.xlu0 %v1900_v10, %s2147_s13 }
 0x226   :  { %v1902_v12 = vpop.eup %1901 }
 0x227   :  { %386 = vrot.lane.b32.xlu1 %v1902_v12, %s2147_s13 }
 0x295   :  { %v385_v13 = vpop.permute.xlu0 %384 }
 0x296   :  { %v390_v15 = vmul.f32 %v1896_v58, %v385_v13 }
 0x299   :  { %v387_v14 = vpop.permute.xlu1 %386 }
 0x29a   :  { %v391_v16 = vmul.f32 %v1898_v61, %v387_v14 }
 0x29c   :  { %v392_v17 = vpack.c.bf16 %v391_v16, %v390_v15 }
 0x29e   :  { %394 = vrot.lane.b32.xlu0 %v392_v17, %s2153_s19 }
 0x310   :  { %v395_v18 = vpop.permute.xlu0 %394 }
 0x311   :  { %397 = vst.msk [vmem:[#allocation3] sm:$0xff] %vm297_vm2, %v395_v18  ;;  %1773 = vmatmul.mubr.msk.bf16.vlgmr.msra.gmra.mrb[12].mxu1 %vm297_vm2, %v395_v18 }
 0x312   :  { %1780 = vmatprep.mubr.msk.bf16.mxu1 %vm2152_vm1, %v2151_v5  ;;  %1777 = vmatpush3.bf16.msra.mxu1 %v1873_v53 }
 0x313   :  { %1778 = vmatprep.subr.bf16.mxu1 %v2151_v5 }
 0x316   :  { %1779 = vmatpush3.bf16.msra.mxu1 %v1874_v54 }
 0x317   :  { %1784 = vmatprep.subr.bf16.mxu1 %v2151_v5 }
 0x3e4   :  { %v455_v20 = vpop.f32.mrb[12].mxu1 }
 0x3e5   :  { %v462_v21 = vadd.f32 %v455_v20, %v400_v19  ;;  %v1774_v22 = vpop.f32.mrb[13].mxu1 }
 0x3e6   :  { %v458_v24 = vpop.f32.mrb[14].mxu1 }
 0x3e7   :  { %1903 = vtanh.f32 %v462_v21  ;;  %v463_v25 = vadd.f32 %v458_v24, %v401_v23  ;;  %v1775_v26 = vpop.f32.mrb[15].mxu1  ;;  %v1648_v32 = vmul.f32 -1.442695, %v462_v21 }
 0x3e9   :  { %1905 = vtanh.f32 %v463_v25  ;;  %v1649_v33 = vmul.f32 -1.442695, %v463_v25 }
 0x3ea   :  { %1907 = vpow2.f32 %v1648_v32 }
 0x3eb   :  { %1909 = vpow2.f32 %v1649_v33 }
 0x3f1   :  { %v1904_v28 = vpop.eup %1903 }
 0x3f2   :  { %482 = vrot.lane.b32.xlu1 %v1904_v28, %s2147_s13 }
 0x3f3   :  { %v1906_v31 = vpop.eup %1905 }
 0x3f4   :  { %484 = vrot.lane.b32.xlu0 %v1906_v31, %s2147_s13  ;;  %v1908_v34 = vpop.eup %1907 }
 0x3f5   :  { %v1910_v35 = vpop.eup %1909  ;;  %v470_v36 = vadd.f32 1.0, %v1908_v34 }
 0x3f6   :  { %v471_v37 = vadd.f32 1.0, %v1910_v35 }
 0x3f7   :  { %1911 = vrcp.f32 %v470_v36 }
 0x3f8   :  { %1913 = vrcp.f32 %v471_v37 }
 0x401   :  { %v1912_v30 = vpop.eup %1911 }
 0x402   :  { %v1914_v42 = vpop.eup %1913  ;;  %v478_v45 = vmul.f32 %v1912_v30, %v378_v3  ;;  %v1751_v3 = vpop.f32.mrb[6].mxu0 }
 0x403   :  { %v479_v48 = vmul.f32 %v1914_v42, %v379_v7  ;;  %v227_v4 = vadd.f32 %v1751_v3, %v2267_v11  ;;  %v218_v6 = vpop.f32.mrb[7].mxu0 }
 0x404   :  { %v219_v7 = vadd.f32 %v2267_v11, %v218_v6 }
 0x405   :  { %v2341_v8 = vpack.c.bf16 %v227_v4, %v224_v63 }
 0x406   :  { %v264_v9 = vpack.c.bf16 %v219_v7, %v216_v2 }
 0x407   :  { %v642_v53 = vunpack.c.l.bf16 %v2341_v8 }
 0x408   :  { %v521_v12 = vunpack.c.l.bf16 %v264_v9  ;;  %v522_v16 = vunpack.c.h.bf16 %v264_v9 }
 0x464   :  { %v483_v38 = vpop.permute.xlu1 %482 }
 0x465   :  { %v488_v39 = vmul.f32 %v1912_v30, %v483_v38 }
 0x466   :  { %v485_v43 = vpop.permute.xlu0 %484 }
 0x467   :  { %492 = vrot.lane.b32.xlu1 %v488_v39, %s2153_s19  ;;  %v489_v44 = vmul.f32 %v1914_v42, %v485_v43  ;;  %v1875_v43 = vld [vmem:[%s2603_s3] sm:$0xff]  }
 0x469   :  { %494 = vrot.lane.b32.xlu0 %v489_v44, %s2153_s19  ;;  %v1876_v44 = vld [vmem:[%s2603_s3 + $0x8] sm:$0xff]  }
 0x4d9   :  { %v493_v46 = vpop.permute.xlu1 %492 }
 0x4da   :  { %v2316_v47 = vadd.f32 %v493_v46, %v478_v45 }
 0x4db   :  { %v495_v49 = vpop.permute.xlu0 %494 }
 0x4dc   :  { %1915 = vtanh.f32 %v2316_v47  ;;  %v2319_v50 = vadd.f32 %v495_v49, %v479_v48 }
 0x4de   :  { %1917 = vtanh.f32 %v2319_v50 }
 0x4e6   :  { %v1916_v55 = vpop.eup %1915 }
 0x4e7   :  { %504 = vrot.lane.b32.xlu1 %v1916_v55, %s2147_s13 }
 0x4e8   :  { %v1918_v56 = vpop.eup %1917 }
 0x4e9   :  { %506 = vrot.lane.b32.xlu0 %v1918_v56, %s2147_s13 }
 0x559   :  { %v505_v57 = vpop.permute.xlu1 %504 }
 0x55a   :  { %v510_v59 = vmul.f32 %v1912_v30, %v505_v57  ;;  %v643_v57 = vunpack.c.h.bf16 %v2341_v8 }
 0x55b   :  { %v507_v58 = vpop.permute.xlu0 %506 }
 0x55c   :  { %v511_v60 = vmul.f32 %v1914_v42, %v507_v58 }
 0x55e   :  { %v512_v61 = vpack.c.bf16 %v511_v60, %v510_v59 }
 0x560   :  { %514 = vrot.lane.b32.xlu1 %v512_v61, %s2153_s19 }
 0x5d2   :  { %v515_v10 = vpop.permute.xlu1 %514 }
 0x5d3   :  { %518 = vst.msk [vmem:[#allocation3 + $0x8] sm:$0xff] %vm297_vm2, %v515_v10  ;;  %1781 = vmatmul.mubr.msk.bf16.vlgmr.msra.gmra.mrb[16].mxu1 %vm297_vm2, %v515_v10 }
 0x5d4   :  { %1788 = vmatprep.mubr.msk.bf16.mxu1 %vm2152_vm1, %v2151_v5  ;;  %1785 = vmatpush3.bf16.msra.mxu1 %v1875_v43 }
 0x5d5   :  { %1786 = vmatprep.subr.bf16.mxu1 %v2151_v5 }
 0x5d8   :  { %1787 = vmatpush3.bf16.msra.mxu1 %v1876_v44 }
 0x5d9   :  { %1800 = vmatprep.subr.bf16.mxu1 %v2151_v5 }
 0x6a6   :  { %v576_v13 = vpop.f32.mrb[16].mxu1 }
 0x6a7   :  { %v583_v14 = vadd.f32 %v576_v13, %v521_v12  ;;  %v1782_v15 = vpop.f32.mrb[17].mxu1 }
 0x6a8   :  { %v579_v17 = vpop.f32.mrb[18].mxu1 }
 0x6a9   :  { %1919 = vtanh.f32 %v583_v14  ;;  %v584_v18 = vadd.f32 %v579_v17, %v522_v16  ;;  %v1783_v11 = vpop.f32.mrb[19].mxu1  ;;  %v1653_v21 = vmul.f32 -1.442695, %v583_v14 }
 0x6ab   :  { %1921 = vtanh.f32 %v584_v18  ;;  %v1654_v22 = vmul.f32 -1.442695, %v584_v18 }
 0x6ac   :  { %1923 = vpow2.f32 %v1653_v21 }
 0x6ad   :  { %1925 = vpow2.f32 %v1654_v22 }
 0x6b3   :  { %v1920_v19 = vpop.eup %1919 }
 0x6b4   :  { %603 = vrot.lane.b32.xlu0 %v1920_v19, %s2147_s13  ;;  %v1877_v19 = vld [vmem:[%s2603_s3] sm:$0xff]  }
 0x6b5   :  { %v1922_v20 = vpop.eup %1921  ;;  %1793 = vmatpush3.bf16.msra.mxu0 %v1877_v19 }
 0x6b6   :  { %605 = vrot.lane.b32.xlu1 %v1922_v20, %s2147_s13  ;;  %v1924_v23 = vpop.eup %1923  ;;  %v1878_v20 = vld [vmem:[%s2603_s3 + $0x8] sm:$0xff]   ;;  %1794 = vmatprep.subr.bf16.mxu0 %v2151_v5 }
 0x6b7   :  { %v1926_v24 = vpop.eup %1925  ;;  %v591_v25 = vadd.f32 1.0, %v1924_v23 }
 0x6b8   :  { %v592_v26 = vadd.f32 1.0, %v1926_v24 }
 0x6b9   :  { %1927 = vrcp.f32 %v591_v25  ;;  %1795 = vmatpush3.bf16.msra.mxu0 %v1878_v20 }
 0x6ba   :  { %1929 = vrcp.f32 %v592_v26  ;;  %1808 = vmatprep.subr.bf16.mxu0 %v2151_v5 }
 0x6c3   :  { %v1928_v28 = vpop.eup %1927 }
 0x6c4   :  { %v1930_v33 = vpop.eup %1929  ;;  %v599_v36 = vmul.f32 %v1928_v28, %v2316_v47 }
 0x6c5   :  { %v600_v38 = vmul.f32 %v1930_v33, %v2319_v50 }
 0x726   :  { %v604_v31 = vpop.permute.xlu0 %603 }
 0x727   :  { %v609_v32 = vmul.f32 %v1928_v28, %v604_v31 }
 0x728   :  { %v606_v34 = vpop.permute.xlu1 %605 }
 0x729   :  { %613 = vrot.lane.b32.xlu0 %v609_v32, %s2153_s19  ;;  %v610_v35 = vmul.f32 %v1930_v33, %v606_v34  ;;  %v763_v32 = vunpack.c.l.bf16 %v2279_v29 }
 0x72b   :  { %615 = vrot.lane.b32.xlu1 %v610_v35, %s2153_s19 }
 0x79b   :  { %v614_v37 = vpop.permute.xlu0 %613 }
 0x79c   :  { %v619_v30 = vadd.f32 %v614_v37, %v599_v36  ;;  %v764_v36 = vunpack.c.h.bf16 %v2279_v29 }
 0x79d   :  { %v616_v39 = vpop.permute.xlu1 %615 }
 0x79e   :  { %1931 = vtanh.f32 %v619_v30  ;;  %v620_v42 = vadd.f32 %v616_v39, %v600_v38 }
 0x7a0   :  { %1933 = vtanh.f32 %v620_v42 }
 0x7a8   :  { %v1932_v45 = vpop.eup %1931 }
 0x7a9   :  { %625 = vrot.lane.b32.xlu0 %v1932_v45, %s2147_s13 }
 0x7aa   :  { %v1934_v46 = vpop.eup %1933 }
 0x7ab   :  { %627 = vrot.lane.b32.xlu1 %v1934_v46, %s2147_s13 }
 0x81b   :  { %v626_v47 = vpop.permute.xlu0 %625 }
 0x81c   :  { %v631_v49 = vmul.f32 %v1928_v28, %v626_v47 }
 0x81d   :  { %v628_v48 = vpop.permute.xlu1 %627 }
 0x81e   :  { %v632_v50 = vmul.f32 %v1930_v33, %v628_v48 }
 0x820   :  { %v633_v51 = vpack.c.bf16 %v632_v50, %v631_v49 }
 0x822   :  { %635 = vrot.lane.b32.xlu0 %v633_v51, %s2153_s19 }
 0x894   :  { %v636_v52 = vpop.permute.xlu0 %635 }
 0x895   :  { %639 = vst.msk [vmem:[#allocation3 + $0x10] sm:$0xff] %vm297_vm2, %v636_v52  ;;  %1789 = vmatmul.mubr.msk.bf16.vlgmr.msra.gmra.mrb[20].mxu1 %vm297_vm2, %v636_v52 }
 0x896   :  { %1804 = vmatprep.mubr.msk.bf16.mxu1 %vm2152_vm1, %v2151_v5 }
 0x968   :  { %v697_v54 = vpop.f32.mrb[20].mxu1 }
 0x969   :  { %v704_v55 = vadd.f32 %v697_v54, %v642_v53  ;;  %v1790_v56 = vpop.f32.mrb[21].mxu1 }
 0x96a   :  { %v700_v58 = vpop.f32.mrb[22].mxu1 }
 0x96b   :  { %1935 = vtanh.f32 %v704_v55  ;;  %v705_v59 = vadd.f32 %v700_v58, %v643_v57  ;;  %v1791_v60 = vpop.f32.mrb[23].mxu1  ;;  %v1658_v63 = vmul.f32 -1.442695, %v704_v55 }
 0x96c   :  { %v1879_v60 = vld [vmem:[%s2603_s3] sm:$0xff]  }
 0x96d   :  { %1937 = vtanh.f32 %v705_v59  ;;  %v1659_v1 = vmul.f32 -1.442695, %v705_v59  ;;  %1801 = vmatpush3.bf16.msra.mxu1 %v1879_v60 }
 0x96e   :  { %1939 = vpow2.f32 %v1658_v63  ;;  %1802 = vmatprep.subr.bf16.mxu1 %v2151_v5 }
 0x96f   :  { %1941 = vpow2.f32 %v1659_v1 }
 0x975   :  { %v1936_v61 = vpop.eup %1935 }
 0x976   :  { %724 = vrot.lane.b32.xlu1 %v1936_v61, %s2147_s13  ;;  %v1880_v61 = vld [vmem:[%s2603_s3 + $0x8] sm:$0xff]  }
 0x977   :  { %v1938_v62 = vpop.eup %1937  ;;  %1803 = vmatpush3.bf16.msra.mxu1 %v1880_v61 }
 0x978   :  { %726 = vrot.lane.b32.xlu0 %v1938_v62, %s2147_s13  ;;  %v1940_v2 = vpop.eup %1939  ;;  %1816 = vmatprep.subr.bf16.mxu1 %v2151_v5 }
 0x979   :  { %v1942_v3 = vpop.eup %1941  ;;  %v712_v4 = vadd.f32 1.0, %v1940_v2 }
 0x97a   :  { %v713_v6 = vadd.f32 1.0, %v1942_v3 }
 0x97b   :  { %1943 = vrcp.f32 %v712_v4 }
 0x97c   :  { %1945 = vrcp.f32 %v713_v6 }
 0x985   :  { %v1944_v7 = vpop.eup %1943 }
 0x986   :  { %v1946_v10 = vpop.eup %1945  ;;  %v720_v14 = vmul.f32 %v1944_v7, %v619_v30 }
 0x987   :  { %v721_v17 = vmul.f32 %v1946_v10, %v620_v42 }
 0x9e8   :  { %v725_v8 = vpop.permute.xlu1 %724 }
 0x9e9   :  { %v730_v9 = vmul.f32 %v1944_v7, %v725_v8  ;;  %v884_v8 = vunpack.c.l.bf16 %v2276_v27 }
 0x9ea   :  { %v727_v12 = vpop.permute.xlu0 %726 }
 0x9eb   :  { %734 = vrot.lane.b32.xlu1 %v730_v9, %s2153_s19  ;;  %v731_v13 = vmul.f32 %v1946_v10, %v727_v12 }
 0x9ed   :  { %736 = vrot.lane.b32.xlu0 %v731_v13, %s2153_s19  ;;  %v885_v13 = vunpack.c.h.bf16 %v2276_v27 }
 0xa5d   :  { %v735_v15 = vpop.permute.xlu1 %734 }
 0xa5e   :  { %v740_v16 = vadd.f32 %v735_v15, %v720_v14 }
 0xa5f   :  { %v737_v18 = vpop.permute.xlu0 %736 }
 0xa60   :  { %1947 = vtanh.f32 %v740_v16  ;;  %v741_v11 = vadd.f32 %v737_v18, %v721_v17 }
 0xa62   :  { %1949 = vtanh.f32 %v741_v11 }
 0xa6a   :  { %v1948_v21 = vpop.eup %1947 }
 0xa6b   :  { %746 = vrot.lane.b32.xlu1 %v1948_v21, %s2147_s13 }
 0xa6c   :  { %v1950_v22 = vpop.eup %1949 }
 0xa6d   :  { %748 = vrot.lane.b32.xlu0 %v1950_v22, %s2147_s13 }
 0xadd   :  { %v747_v23 = vpop.permute.xlu1 %746 }
 0xade   :  { %v752_v25 = vmul.f32 %v1944_v7, %v747_v23 }
 0xadf   :  { %v749_v24 = vpop.permute.xlu0 %748 }
 0xae0   :  { %v753_v26 = vmul.f32 %v1946_v10, %v749_v24 }
 0xae2   :  { %v754_v28 = vpack.c.bf16 %v753_v26, %v752_v25 }
 0xae4   :  { %756 = vrot.lane.b32.xlu1 %v754_v28, %s2153_s19 }
 0xb56   :  { %v757_v31 = vpop.permute.xlu1 %756 }
 0xb57   :  { %760 = vst.msk [vmem:[#allocation3 + $0x18] sm:$0xff] %vm297_vm2, %v757_v31  ;;  %1797 = vmatmul.mubr.msk.bf16.vlgmr.msra.gmra.mrb[8].mxu0 %vm297_vm2, %v757_v31 }
 0xb58   :  { %1812 = vmatprep.mubr.msk.bf16.mxu0 %vm2152_vm1, %v2151_v5 }
 0xc2a   :  { %v818_v33 = vpop.f32.mrb[8].mxu0 }
 0xc2b   :  { %v825_v34 = vadd.f32 %v818_v33, %v763_v32  ;;  %v1798_v35 = vpop.f32.mrb[9].mxu0 }
 0xc2c   :  { %v821_v37 = vpop.f32.mrb[10].mxu0 }
 0xc2d   :  { %1951 = vtanh.f32 %v825_v34  ;;  %v826_v30 = vadd.f32 %v821_v37, %v764_v36  ;;  %v1799_v38 = vpop.f32.mrb[11].mxu0  ;;  %v1663_v43 = vmul.f32 -1.442695, %v825_v34 }
 0xc2e   :  { %v1882_v38 = vld [vmem:[%s2603_s3 + $0x8] sm:$0xff]  }
 0xc2f   :  { %1953 = vtanh.f32 %v826_v30  ;;  %v1664_v44 = vmul.f32 -1.442695, %v826_v30  ;;  %v1881_v30 = vld [vmem:[%s2603_s3] sm:$0xff]  }
 0xc30   :  { %1955 = vpow2.f32 %v1663_v43  ;;  %1809 = vmatpush3.bf16.msra.mxu0 %v1881_v30 }
 0xc31   :  { %1957 = vpow2.f32 %v1664_v44  ;;  %1810 = vmatprep.subr.bf16.mxu0 %v2151_v5 }
 0xc34   :  { %1811 = vmatpush3.bf16.msra.mxu0 %v1882_v38 }
 0xc37   :  { %v1952_v39 = vpop.eup %1951 }
 0xc38   :  { %845 = vrot.lane.b32.xlu0 %v1952_v39, %s2147_s13 }
 0xc39   :  { %v1954_v42 = vpop.eup %1953 }
 0xc3a   :  { %847 = vrot.lane.b32.xlu1 %v1954_v42, %s2147_s13  ;;  %v1956_v45 = vpop.eup %1955 }
 0xc3b   :  { %v1958_v46 = vpop.eup %1957  ;;  %v833_v47 = vadd.f32 1.0, %v1956_v45 }
 0xc3c   :  { %v834_v48 = vadd.f32 1.0, %v1958_v46 }
 0xc3d   :  { %1959 = vrcp.f32 %v833_v47 }
 0xc3e   :  { %1961 = vrcp.f32 %v834_v48 }
 0xc47   :  { %v1960_v29 = vpop.eup %1959 }
 0xc48   :  { %v1962_v51 = vpop.eup %1961  ;;  %v841_v54 = vmul.f32 %v1960_v29, %v740_v16 }
 0xc49   :  { %v842_v57 = vmul.f32 %v1962_v51, %v741_v11 }
 0xcaa   :  { %v846_v49 = vpop.permute.xlu0 %845 }
 0xcab   :  { %v851_v50 = vmul.f32 %v1960_v29, %v846_v49 }
 0xcac   :  { %v848_v52 = vpop.permute.xlu1 %847 }
 0xcad   :  { %855 = vrot.lane.b32.xlu0 %v851_v50, %s2153_s19  ;;  %v852_v53 = vmul.f32 %v1962_v51, %v848_v52  ;;  %v1006_v52 = vunpack.c.h.bf16 %v2289_v41 }
 0xcaf   :  { %857 = vrot.lane.b32.xlu1 %v852_v53, %s2153_s19 }
 0xd1f   :  { %v856_v55 = vpop.permute.xlu0 %855 }
 0xd20   :  { %v861_v56 = vadd.f32 %v856_v55, %v841_v54 }
 0xd21   :  { %v858_v58 = vpop.permute.xlu1 %857 }
 0xd22   :  { %1963 = vtanh.f32 %v861_v56  ;;  %v862_v59 = vadd.f32 %v858_v58, %v842_v57 }
 0xd24   :  { %1965 = vtanh.f32 %v862_v59 }
 0xd2c   :  { %v1964_v62 = vpop.eup %1963 }
 0xd2d   :  { %867 = vrot.lane.b32.xlu0 %v1964_v62, %s2147_s13 }
 0xd2e   :  { %v1966_v63 = vpop.eup %1965 }
 0xd2f   :  { %869 = vrot.lane.b32.xlu1 %v1966_v63, %s2147_s13 }
 0xd9f   :  { %v868_v1 = vpop.permute.xlu0 %867 }
 0xda0   :  { %v873_v3 = vmul.f32 %v1960_v29, %v868_v1  ;;  %v1005_v29 = vunpack.c.l.bf16 %v2289_v41 }
 0xda1   :  { %v870_v2 = vpop.permute.xlu1 %869 }
 0xda2   :  { %v874_v4 = vmul.f32 %v1962_v51, %v870_v2 }
 0xda4   :  { %v875_v6 = vpack.c.bf16 %v874_v4, %v873_v3 }
 0xda6   :  { %877 = vrot.lane.b32.xlu0 %v875_v6, %s2153_s19 }
 0xe18   :  { %v878_v7 = vpop.permute.xlu0 %877 }
 0xe19   :  { %881 = vst.msk [vmem:[#allocation3 + $0x20] sm:$0xff] %vm297_vm2, %v878_v7  ;;  %1805 = vmatmul.mubr.msk.bf16.vlgmr.msra.gmra.mrb[24].mxu1 %vm297_vm2, %v878_v7 }
 0xe1a   :  { %1820 = vmatprep.mubr.msk.bf16.mxu1 %vm2152_vm1, %v2151_v5 }
 0xeec   :  { %v939_v9 = vpop.f32.mrb[24].mxu1 }
 0xeed   :  { %v946_v10 = vadd.f32 %v939_v9, %v884_v8  ;;  %v1806_v12 = vpop.f32.mrb[25].mxu1 }
 0xeee   :  { %v942_v14 = vpop.f32.mrb[26].mxu1 }
 0xeef   :  { %1967 = vtanh.f32 %v946_v10  ;;  %v947_v15 = vadd.f32 %v942_v14, %v885_v13  ;;  %v1807_v16 = vpop.f32.mrb[27].mxu1  ;;  %v1668_v11 = vmul.f32 -1.442695, %v946_v10  ;;  %v1883_v14 = vld [vmem:[%s2603_s3] sm:$0xff]  }
 0xef0   :  { %1817 = vmatpush3.bf16.msra.mxu1 %v1883_v14  ;;  %v1270_v14 = vld [vmem:[#allocation3 + $0x8] sm:$0xff] }
 0xef1   :  { %1969 = vtanh.f32 %v947_v15  ;;  %v1669_v19 = vmul.f32 -1.442695, %v947_v15  ;;  %v1884_v15 = vld [vmem:[%s2603_s3 + $0x8] sm:$0xff]   ;;  %1818 = vmatprep.subr.bf16.mxu1 %v2151_v5  ;;  %v1126_v5 = vunpack.c.l.bf16 %v2287_v40 }
 0xef2   :  { %1971 = vpow2.f32 %v1668_v11 }
 0xef3   :  { %1973 = vpow2.f32 %v1669_v19 }
 0xef4   :  { %1819 = vmatpush3.bf16.msra.mxu1 %v1884_v15 }
 0xef9   :  { %v1968_v17 = vpop.eup %1967 }
 0xefa   :  { %966 = vrot.lane.b32.xlu1 %v1968_v17, %s2147_s13 }
 0xefb   :  { %v1970_v18 = vpop.eup %1969 }
 0xefc   :  { %968 = vrot.lane.b32.xlu0 %v1970_v18, %s2147_s13  ;;  %v1972_v20 = vpop.eup %1971 }
 0xefd   :  { %v1974_v21 = vpop.eup %1973  ;;  %v954_v22 = vadd.f32 1.0, %v1972_v20 }
 0xefe   :  { %v955_v23 = vadd.f32 1.0, %v1974_v21 }
 0xeff   :  { %1975 = vrcp.f32 %v954_v22 }
 0xf00   :  { %1977 = vrcp.f32 %v955_v23 }
 0xf09   :  { %v1976_v27 = vpop.eup %1975 }
 0xf0a   :  { %v1978_v26 = vpop.eup %1977  ;;  %v962_v32 = vmul.f32 %v1976_v27, %v861_v56 }
 0xf0b   :  { %v963_v35 = vmul.f32 %v1978_v26, %v862_v59 }
 0xf6c   :  { %v967_v24 = vpop.permute.xlu1 %966 }
 0xf6d   :  { %v972_v25 = vmul.f32 %v1976_v27, %v967_v24 }
 0xf6e   :  { %v969_v28 = vpop.permute.xlu0 %968 }
 0xf6f   :  { %976 = vrot.lane.b32.xlu1 %v972_v25, %s2153_s19  ;;  %v973_v31 = vmul.f32 %v1978_v26, %v969_v28  ;;  %v1127_v25 = vunpack.c.h.bf16 %v2287_v40 }
 0xf71   :  { %978 = vrot.lane.b32.xlu0 %v973_v31, %s2153_s19 }
 0xfe1   :  { %v977_v33 = vpop.permute.xlu1 %976 }
 0xfe2   :  { %v982_v34 = vadd.f32 %v977_v33, %v962_v32 }
 0xfe3   :  { %v979_v36 = vpop.permute.xlu0 %978 }
 0xfe4   :  { %1979 = vtanh.f32 %v982_v34  ;;  %v983_v37 = vadd.f32 %v979_v36, %v963_v35 }
 0xfe6   :  { %1981 = vtanh.f32 %v983_v37 }
 0xfee   :  { %v1980_v39 = vpop.eup %1979 }
 0xfef   :  { %988 = vrot.lane.b32.xlu1 %v1980_v39, %s2147_s13 }
 0xff0   :  { %v1982_v42 = vpop.eup %1981 }
 0xff1   :  { %990 = vrot.lane.b32.xlu0 %v1982_v42, %s2147_s13 }
0x1061   :  { %v989_v43 = vpop.permute.xlu1 %988 }
0x1062   :  { %v994_v45 = vmul.f32 %v1976_v27, %v989_v43 }
0x1063   :  { %v991_v44 = vpop.permute.xlu0 %990 }
0x1064   :  { %v995_v46 = vmul.f32 %v1978_v26, %v991_v44 }
0x1066   :  { %v996_v47 = vpack.c.bf16 %v995_v46, %v994_v45 }
0x1068   :  { %998 = vrot.lane.b32.xlu1 %v996_v47, %s2153_s19 }
0x10da   :  { %v999_v48 = vpop.permute.xlu1 %998 }
0x10db   :  { %1002 = vst.msk [vmem:[#allocation3 + $0x28] sm:$0xff] %vm297_vm2, %v999_v48  ;;  %1813 = vmatmul.mubr.msk.bf16.vlgmr.msra.gmra.mrb[12].mxu0 %vm297_vm2, %v999_v48 }
0x11ae   :  { %v1060_v49 = vpop.f32.mrb[12].mxu0 }
0x11af   :  { %v1067_v50 = vadd.f32 %v1060_v49, %v1005_v29  ;;  %v1814_v51 = vpop.f32.mrb[13].mxu0 }
0x11b0   :  { %v1063_v53 = vpop.f32.mrb[14].mxu0 }
0x11b1   :  { %1983 = vtanh.f32 %v1067_v50  ;;  %v1068_v54 = vadd.f32 %v1063_v53, %v1006_v52  ;;  %v1815_v55 = vpop.f32.mrb[15].mxu0  ;;  %v1673_v58 = vmul.f32 -1.442695, %v1067_v50  ;;  %v1245_v52 = vld [vmem:[%s2601_s1] sm:$0xff] }
0x11b2   :  { %v1885_v55 = vld [vmem:[%s2605_s5] sm:$0xff]  }
0x11b3   :  { %1985 = vtanh.f32 %v1068_v54  ;;  %v1674_v59 = vmul.f32 -1.442695, %v1068_v54  ;;  %v1246_v54 = vld [vmem:[%s2601_s1 + $0x8] sm:$0xff]  ;;  %1824 = vmatprep.subr.bf16.mxu0 %v1885_v55 }
0x11b4   :  { %1987 = vpow2.f32 %v1673_v58  ;;  %1825 = vmatpush3.bf16.msra.mxu0 %v1885_v55 }
0x11b5   :  { %1989 = vpow2.f32 %v1674_v59 }
0x11bb   :  { %v1984_v56 = vpop.eup %1983 }
0x11bc   :  { %1087 = vrot.lane.b32.xlu0 %v1984_v56, %s2147_s13  ;;  %v1886_v56 = vld [vmem:[%s2605_s5 + $0x8] sm:$0xff]  }
0x11bd   :  { %v1986_v57 = vpop.eup %1985  ;;  %1826 = vmatprep.subr.bf16.mxu0 %v1886_v56 }
0x11be   :  { %1089 = vrot.lane.b32.xlu1 %v1986_v57, %s2147_s13  ;;  %v1988_v60 = vpop.eup %1987  ;;  %1827 = vmatpush3.bf16.msra.mxu0 %v1886_v56 }
0x11bf   :  { %v1990_v61 = vpop.eup %1989  ;;  %v1075_v62 = vadd.f32 1.0, %v1988_v60 }
0x11c0   :  { %v1076_v63 = vadd.f32 1.0, %v1990_v61 }
0x11c1   :  { %1991 = vrcp.f32 %v1075_v62 }
0x11c2   :  { %1993 = vrcp.f32 %v1076_v63 }
0x11cb   :  { %v1992_v41 = vpop.eup %1991 }
0x11cc   :  { %v1994_v3 = vpop.eup %1993  ;;  %v1083_v7 = vmul.f32 %v1992_v41, %v982_v34 }
0x11cd   :  { %v1084_v10 = vmul.f32 %v1994_v3, %v983_v37 }
0x122e   :  { %v1088_v1 = vpop.permute.xlu0 %1087 }
0x122f   :  { %v1093_v2 = vmul.f32 %v1992_v41, %v1088_v1 }
0x1230   :  { %v1090_v4 = vpop.permute.xlu1 %1089 }
0x1231   :  { %1097 = vrot.lane.b32.xlu0 %v1093_v2, %s2153_s19  ;;  %v1094_v6 = vmul.f32 %v1994_v3, %v1090_v4 }
0x1233   :  { %1099 = vrot.lane.b32.xlu1 %v1094_v6, %s2153_s19 }
0x12a3   :  { %v1098_v8 = vpop.permute.xlu0 %1097 }
0x12a4   :  { %v1103_v9 = vadd.f32 %v1098_v8, %v1083_v7 }
0x12a5   :  { %v1100_v12 = vpop.permute.xlu1 %1099 }
0x12a6   :  { %1995 = vtanh.f32 %v1103_v9  ;;  %v1104_v13 = vadd.f32 %v1100_v12, %v1084_v10 }
0x12a8   :  { %1997 = vtanh.f32 %v1104_v13 }
0x12b0   :  { %v1996_v16 = vpop.eup %1995 }
0x12b1   :  { %1109 = vrot.lane.b32.xlu0 %v1996_v16, %s2147_s13 }
0x12b2   :  { %v1998_v17 = vpop.eup %1997 }
0x12b3   :  { %1111 = vrot.lane.b32.xlu1 %v1998_v17, %s2147_s13  ;;  %v1271_v17 = vld [vmem:[#allocation3 + $0x10] sm:$0xff] }
0x1323   :  { %v1110_v18 = vpop.permute.xlu0 %1109 }
0x1324   :  { %v1115_v19 = vmul.f32 %v1992_v41, %v1110_v18 }
0x1325   :  { %v1112_v11 = vpop.permute.xlu1 %1111 }
0x1326   :  { %v1116_v20 = vmul.f32 %v1994_v3, %v1112_v11 }
0x1328   :  { %v1117_v21 = vpack.c.bf16 %v1116_v20, %v1115_v19 }
0x132a   :  { %1119 = vrot.lane.b32.xlu0 %v1117_v21, %s2153_s19 }
0x139c   :  { %v1120_v22 = vpop.permute.xlu0 %1119 }
0x139d   :  { %1123 = vst.msk [vmem:[#allocation3 + $0x30] sm:$0xff] %vm297_vm2, %v1120_v22  ;;  %1821 = vmatmul.mubr.msk.bf16.vlgmr.msra.gmra.mrb[28].mxu1 %vm297_vm2, %v1120_v22 }
0x1470   :  { %v1181_v23 = vpop.f32.mrb[28].mxu1 }
0x1471   :  { %v1188_v27 = vadd.f32 %v1181_v23, %v1126_v5  ;;  %v1822_v24 = vpop.f32.mrb[29].mxu1  ;;  %v1272_v23 = vld [vmem:[#allocation3 + $0x18] sm:$0xff] }
0x1472   :  { %v1184_v26 = vpop.f32.mrb[30].mxu1 }
0x1473   :  { %1999 = vtanh.f32 %v1188_v27  ;;  %v1189_v28 = vadd.f32 %v1184_v26, %v1127_v25  ;;  %v1823_v31 = vpop.f32.mrb[31].mxu1  ;;  %v1678_v34 = vmul.f32 -1.442695, %v1188_v27  ;;  %v1273_v26 = vld [vmem:[#allocation3 + $0x20] sm:$0xff] }
0x1475   :  { %2001 = vtanh.f32 %v1189_v28  ;;  %v1679_v35 = vmul.f32 -1.442695, %v1189_v28 }
0x1476   :  { %2003 = vpow2.f32 %v1678_v34 }
0x1477   :  { %2005 = vpow2.f32 %v1679_v35  ;;  %v1275_v35 = vld [vmem:[#allocation3 + $0x30] sm:$0xff] }
0x147d   :  { %v2000_v32 = vpop.eup %1999 }
0x147e   :  { %1208 = vrot.lane.b32.xlu1 %v2000_v32, %s2147_s13 }
0x147f   :  { %v2002_v33 = vpop.eup %2001 }
0x1480   :  { %1210 = vrot.lane.b32.xlu0 %v2002_v33, %s2147_s13  ;;  %v2004_v36 = vpop.eup %2003  ;;  %v1274_v33 = vld [vmem:[#allocation3 + $0x28] sm:$0xff] }
0x1481   :  { %v2006_v37 = vpop.eup %2005  ;;  %v1196_v30 = vadd.f32 1.0, %v2004_v36 }
0x1482   :  { %v1197_v38 = vadd.f32 1.0, %v2006_v37 }
0x1483   :  { %2007 = vrcp.f32 %v1196_v30 }
0x1484   :  { %2009 = vrcp.f32 %v1197_v38 }
0x148d   :  { %v2008_v40 = vpop.eup %2007 }
0x148e   :  { %v2010_v43 = vpop.eup %2009  ;;  %v1204_v46 = vmul.f32 %v2008_v40, %v1103_v9  ;;  %v1269_v9 = vld [vmem:[#allocation3] sm:$0xff] }
0x148f   :  { %v1205_v29 = vmul.f32 %v2010_v43, %v1104_v13 }
0x14f0   :  { %v1209_v39 = vpop.permute.xlu1 %1208 }
0x14f1   :  { %v1214_v42 = vmul.f32 %v2008_v40, %v1209_v39 }
0x14f2   :  { %v1211_v44 = vpop.permute.xlu0 %1210 }
0x14f3   :  { %1218 = vrot.lane.b32.xlu1 %v1214_v42, %s2153_s19  ;;  %v1215_v45 = vmul.f32 %v2010_v43, %v1211_v44 }
0x14f5   :  { %1220 = vrot.lane.b32.xlu0 %v1215_v45, %s2153_s19 }
0x1565   :  { %v1219_v47 = vpop.permute.xlu1 %1218 }
0x1566   :  { %v1224_v48 = vadd.f32 %v1219_v47, %v1204_v46  ;;  %v1688_v47 = vld [vmem:[%s2606_s6] ss:$0 sm:$0xff]  ;;  %s2154_s6 = smov [#allocation10]  }
0x1567   :  { %v1221_v49 = vpop.permute.xlu0 %1220 }
0x1568   :  { %2011 = vtanh.f32 %v1224_v48  ;;  %v1225_v50 = vadd.f32 %v1221_v49, %v1205_v29 }
0x156a   :  { %2013 = vtanh.f32 %v1225_v50 }
0x1572   :  { %v2012_v51 = vpop.eup %2011 }
0x1573   :  { %1230 = vrot.lane.b32.xlu1 %v2012_v51, %s2147_s13 }
0x1574   :  { %v2014_v53 = vpop.eup %2013 }
0x1575   :  { %1232 = vrot.lane.b32.xlu0 %v2014_v53, %s2147_s13  ;;  %s1610_s13 = sshll.u32 %s2154_s6, 4  ;;  %s1611_s13 = int_to_ptr.vmem [resolvable:$true] %s1610_s13 }
0x1576   :  { %p2122_p11 = scmp.lt.s32.totalorder %s1611_s13, %s1611_s13 }
0x1577   :  { %1248 = vperm.xlu1 %1858, %v1245_v52  }
0x1579   :  { %1251 = vperm.xlu0 %1859, %v1246_v54  }
0x15e5   :  { %v1231_v57 = vpop.permute.xlu1 %1230 }
0x15e6   :  { %v1236_v59 = vmul.f32 %v2008_v40, %v1231_v57 }
0x15e7   :  { %v1233_v58 = vpop.permute.xlu0 %1232 }
0x15e8   :  { %v1237_v60 = vmul.f32 %v2010_v43, %v1233_v58 }
0x15ea   :  { %v1238_v61 = vpack.c.bf16 %v1237_v60, %v1236_v59 }
0x15ec   :  { %1240 = vrot.lane.b32.xlu1 %v1238_v61, %s2153_s19  ;;  %s2117_s19 = scalar_lea.vmem %s1611_s13, 2048 }
0x15ed   :  { %p2118_p10 = scmp.ne.s32.totalorder %s1611_s13, %s2117_s19  ;;  %p2123_p12 = scmp.lt.s32.totalorder %s2117_s19, %s2117_s19 }
0x15ef   :  { %p2124_p13 = por %p2123_p12, %p2122_p11 }
0x15f1   :  { %p2125_p0 = pnand %p2124_p13, %p2118_p10 }
0x15f6   :  { %v2467_v62 = vpop.permute.xlu1 %1248 }
0x15f7   :  { %vm1253_vm3 = vcmp.gt.s32.totalorder %v2467_v62, 0  ;;  %vm1255_vm4 = vcmp.gt.s32.totalorder %v2467_v62, 1  ;;  %vm1257_vm5 = vcmp.gt.s32.totalorder %v2467_v62, 2  ;;  %vm1259_vm13 = vcmp.gt.s32.totalorder %v2467_v62, 3 }
0x15f8   :  { %vm1277_vm6 = vmpackc.low %vm1253_vm3, %vm1253_vm3  ;;  %v2472_v63 = vpop.permute.xlu0 %1251  ;;  %vm1261_vm1 = vcmp.gt.s32.totalorder %v2467_v62, 4 }
0x15f9   :  { %vm1279_vm7 = vmpackc.low %vm1255_vm4, %vm1255_vm4  ;;  %vm1254_vm8 = vcmp.gt.s32.totalorder %v2472_v63, 0  ;;  %v1293_v41 = vsel %vm1277_vm6, 65537, %v2150_v0  ;;  %vm1256_vm9 = vcmp.gt.s32.totalorder %v2472_v63, 1  ;;  %vm1258_vm10 = vcmp.gt.s32.totalorder %v2472_v63, 2 }
0x15fa   :  { %vm1281_vm11 = vmpackc.low %vm1257_vm5, %vm1257_vm5  ;;  %v1295_v1 = vsel %vm1279_vm7, 65537, %v2150_v0  ;;  %vm1260_vm15 = vcmp.gt.s32.totalorder %v2472_v63, 3  ;;  %vm1262_vm4 = vcmp.gt.s32.totalorder %v2472_v63, 4  ;;  %vm1263_vm7 = vcmp.gt.s32.totalorder %v2467_v62, 5 }
0x15fb   :  { %vm1278_vm12 = vmpackc.low %vm1254_vm8, %vm1254_vm8  ;;  %v1297_v3 = vsel %vm1281_vm11, 65537, %v2150_v0 }
0x15fc   :  { %v1294_v2 = vsel %vm1278_vm12, 65537, %v2150_v0  ;;  %vm1280_vm14 = vmpackc.low %vm1256_vm9, %vm1256_vm9 }
0x15fd   :  { %v1680_v4 = vcombine.low %v1293_v41, %v1294_v2  ;;  %v1296_v6 = vsel %vm1280_vm14, 65537, %v2150_v0  ;;  %vm1282_vm0 = vmpackc.low %vm1258_vm10, %vm1258_vm10  ;;  %vm1264_vm10 = vcmp.gt.s32.totalorder %v2472_v63, 5 }
0x15fe   :  { %v1681_v7 = vcombine.low %v1295_v1, %v1296_v6  ;;  %v1298_v8 = vsel %vm1282_vm0, 65537, %v2150_v0  ;;  %vm1283_vm3 = vmpackc.low %vm1259_vm13, %vm1259_vm13  ;;  %vm1265_vm13 = vcmp.gt.s32.totalorder %v2467_v62, 6 }
0x15ff   :  { %vm1333_vm5 = vcmp.ne.s16.totalorder %v1680_v4, 0  ;;  %v1682_v10 = vcombine.low %v1297_v3, %v1298_v8  ;;  %vm1284_vm6 = vmpackc.low %vm1260_vm15, %vm1260_vm15  ;;  %v1299_v12 = vsel %vm1283_vm3, 65537, %v2150_v0  ;;  %vm1266_vm15 = vcmp.gt.s32.totalorder %v2472_v63, 6 }
0x1600   :  { %v1341_v13 = vsel %vm1333_vm5, %v1269_v9, 0  ;;  %vm1334_vm8 = vcmp.ne.s16.totalorder %v1681_v7, 0  ;;  %v1300_v15 = vsel %vm1284_vm6, 65537, %v2150_v0  ;;  %vm1285_vm9 = vmpackc.low %vm1261_vm1, %vm1261_vm1 }
0x1601   :  { %1828 = vmatprep.mubr.msk.bf16.mxu0 %vm297_vm2, %v1341_v13  ;;  %v1342_v16 = vsel %vm1334_vm8, %v1270_v14, 0  ;;  %vm1335_vm11 = vcmp.ne.s16.totalorder %v1682_v10, 0  ;;  %vm1286_vm12 = vmpackc.low %vm1262_vm4, %vm1262_vm4  ;;  %v1301_v18 = vsel %vm1285_vm9, 65537, %v2150_v0  ;;  %v1683_v19 = vcombine.low %v1299_v12, %v1300_v15 }
0x1602   :  { %1829 = vmatmul.mubr.msk.bf16.vlgmr.msra.gmra.mrb[16].mxu0 %vm297_vm2, %v1342_v16  ;;  %v1343_v11 = vsel %vm1335_vm11, %v1271_v17, 0  ;;  %v1302_v20 = vsel %vm1286_vm12, 65537, %v2150_v0  ;;  %vm1287_vm14 = vmpackc.low %vm1263_vm7, %vm1263_vm7  ;;  %vm1267_vm8 = vcmp.gt.s32.totalorder %v2467_v62, 7  ;;  %vm1268_vm9 = vcmp.gt.s32.totalorder %v2472_v63, 7 }
0x1603   :  { %1832 = vmatprep.mubr.msk.bf16.mxu0 %vm297_vm2, %v1343_v11  ;;  %v1684_v21 = vcombine.low %v1301_v18, %v1302_v20  ;;  %vm1288_vm0 = vmpackc.low %vm1264_vm10, %vm1264_vm10  ;;  %vm1336_vm4 = vcmp.ne.s16.totalorder %v1683_v19, 0  ;;  %v1303_v22 = vsel %vm1287_vm14, 65537, %v2150_v0 }
0x1604   :  { %vm1289_vm1 = vmpackc.low %vm1265_vm13, %vm1265_vm13  ;;  %v1304_v5 = vsel %vm1288_vm0, 65537, %v2150_v0  ;;  %v1344_v25 = vsel %vm1336_vm4, %v1272_v23, 0 }
0x1605   :  { %vm1290_vm3 = vmpackc.low %vm1266_vm15, %vm1266_vm15  ;;  %vm1337_vm5 = vcmp.ne.s16.totalorder %v1684_v21, 0  ;;  %v1305_v27 = vsel %vm1289_vm1, 65537, %v2150_v0  ;;  %v1685_v31 = vcombine.low %v1303_v22, %v1304_v5 }
0x1606   :  { %v1306_v24 = vsel %vm1290_vm3, 65537, %v2150_v0  ;;  %v1345_v28 = vsel %vm1337_vm5, %v1273_v26, 0  ;;  %vm1291_vm10 = vmpackc.low %vm1267_vm8, %vm1267_vm8 }
0x1607   :  { %v1686_v32 = vcombine.low %v1305_v27, %v1306_v24  ;;  %vm1338_vm6 = vcmp.ne.s16.totalorder %v1685_v31, 0  ;;  %vm1292_vm11 = vmpackc.low %vm1268_vm9, %vm1268_vm9  ;;  %v1307_v30 = vsel %vm1291_vm10, 65537, %v2150_v0 }
0x1608   :  { %v1346_v34 = vsel %vm1338_vm6, %v1274_v33, 0  ;;  %v1308_v38 = vsel %vm1292_vm11, 65537, %v2150_v0 }
0x1609   :  { %vm1339_vm7 = vcmp.ne.s16.totalorder %v1686_v32, 0  ;;  %v1687_v40 = vcombine.low %v1307_v30, %v1308_v38 }
0x160a   :  { %1833 = vmatmul.mubr.msk.bf16.gmra.mrb[20].mxu0 %vm297_vm2, %v1344_v25  ;;  %v1347_v36 = vsel %vm1339_vm7, %v1275_v35, 0 }
0x160b   :  { %1836 = vmatprep.mubr.msk.bf16.mxu0 %vm297_vm2, %v1345_v28  ;;  %vm1340_vm12 = vcmp.ne.s16.totalorder %v1687_v40, 0 }
0x1612   :  { %1837 = vmatmul.mubr.msk.bf16.gmra.mrb[24].mxu0 %vm297_vm2, %v1346_v34 }
0x1613   :  { %1840 = vmatprep.mubr.msk.bf16.mxu0 %vm297_vm2, %v1347_v36 }
0x165e   :  { %v1241_v37 = vpop.permute.xlu1 %1240 }
0x165f   :  { %1244 = vst.msk [vmem:[#allocation3 + $0x38] sm:$0xff] %vm297_vm2, %v1241_v37 }
0x1666   :  { %v1276_v39 = vld [vmem:[#allocation3 + $0x38] sm:$0xff] }
0x1667   :  { %v1348_v42 = vsel %vm1340_vm12, %v1276_v39, 0 }
0x1668   :  { %1841 = vmatmul.mubr.msk.bf16.gmra.mrb[28].mxu0 %vm297_vm2, %v1348_v42 }
0x16d5   :  { %v1830_v43 = vpop.f32.mrb[16].mxu0 }
0x16d6   :  { %v1430_v44 = vpop.f32.mrb[17].mxu0  ;;  %v1439_v29 = vadd.f32 %v1830_v43, %v1688_v47 }
0x16d7   :  { %v1831_v45 = vpop.f32.mrb[18].mxu0  ;;  %v1431_v51 = vadd.f32 %v1688_v47, %v1430_v44 }
0x16d8   :  { %v1433_v46 = vpop.f32.mrb[19].mxu0  ;;  %v1442_v53 = vadd.f32 %v1831_v45, %v1688_v47 }
0x16d9   :  { %v1434_v57 = vadd.f32 %v1688_v47, %v1433_v46 }
0x16dd   :  { %v1834_v48 = vpop.f32.mrb[20].mxu0 }
0x16de   :  { %v1455_v49 = vadd.f32 %v1834_v48, %v1688_v47  ;;  %v1446_v50 = vpop.f32.mrb[21].mxu0 }
0x16df   :  { %v1447_v0 = vadd.f32 %v1688_v47, %v1446_v50  ;;  %v1835_v52 = vpop.f32.mrb[22].mxu0 }
0x16e0   :  { %v1494_v54 = vmax.f32 %v1439_v29, %v1455_v49  ;;  %v1458_v55 = vadd.f32 %v1835_v52, %v1688_v47  ;;  %v1449_v56 = vpop.f32.mrb[23].mxu0 }
0x16e1   :  { %v1493_v58 = vmax.f32 %v1431_v51, %v1447_v0  ;;  %v1450_v59 = vadd.f32 %v1688_v47, %v1449_v56 }
0x16e2   :  { %v1501_v60 = vmax.f32 %v1442_v53, %v1458_v55 }
0x16e3   :  { %v1500_v61 = vmax.f32 %v1434_v57, %v1450_v59 }
0x16e5   :  { %v1838_v62 = vpop.f32.mrb[24].mxu0 }
0x16e6   :  { %v1471_v63 = vadd.f32 %v1838_v62, %v1688_v47  ;;  %v1462_v41 = vpop.f32.mrb[25].mxu0 }
0x16e7   :  { %v1463_v1 = vadd.f32 %v1688_v47, %v1462_v41  ;;  %v1839_v2 = vpop.f32.mrb[26].mxu0 }
0x16e8   :  { %v1496_v3 = vmax.f32 %v1494_v54, %v1471_v63  ;;  %v1474_v4 = vadd.f32 %v1839_v2, %v1688_v47  ;;  %v1465_v6 = vpop.f32.mrb[27].mxu0 }
0x16e9   :  { %v1495_v7 = vmax.f32 %v1493_v58, %v1463_v1  ;;  %v1466_v8 = vadd.f32 %v1688_v47, %v1465_v6 }
0x16ea   :  { %v1503_v9 = vmax.f32 %v1501_v60, %v1474_v4 }
0x16eb   :  { %v1502_v10 = vmax.f32 %v1500_v61, %v1466_v8 }
0x173b   :  { %v1842_v12 = vpop.f32.mrb[28].mxu0 }
0x173c   :  { %v1487_v13 = vadd.f32 %v1842_v12, %v1688_v47  ;;  %v1478_v14 = vpop.f32.mrb[29].mxu0 }
0x173d   :  { %v1479_v15 = vadd.f32 %v1688_v47, %v1478_v14  ;;  %v1843_v16 = vpop.f32.mrb[30].mxu0 }
0x173e   :  { %v1498_v17 = vmax.f32 %v1496_v3, %v1487_v13  ;;  %v1490_v18 = vadd.f32 %v1843_v16, %v1688_v47  ;;  %v1481_v11 = vpop.f32.mrb[31].mxu0 }
0x173f   :  { %v1497_v19 = vmax.f32 %v1495_v7, %v1479_v15  ;;  %v1482_v20 = vadd.f32 %v1688_v47, %v1481_v11 }
0x1740   :  { %v1505_v21 = vmax.f32 %v1503_v9, %v1490_v18 }
0x1741   :  { %v1499_v22 = vmax.f32 %v1497_v19, %v1498_v17  ;;  %v1504_v5 = vmax.f32 %v1502_v10, %v1482_v20 }
0x1743   :  { %v2524_v23 = vsub.f32 %v1431_v51, %v1499_v22  ;;  %v2526_v27 = vsub.f32 %v1439_v29, %v1499_v22  ;;  %v2528_v24 = vsub.f32 %v1447_v0, %v1499_v22  ;;  %v2530_v25 = vsub.f32 %v1455_v49, %v1499_v22 }
0x1744   :  { %v2532_v26 = vsub.f32 %v1463_v1, %v1499_v22  ;;  %v2534_v28 = vsub.f32 %v1471_v63, %v1499_v22  ;;  %v2536_v31 = vsub.f32 %v1479_v15, %v1499_v22  ;;  %v2538_v32 = vsub.f32 %v1487_v13, %v1499_v22 }
0x1745   :  { %v1523_v33 = vmul.f32 1.442695, %v2524_v23  ;;  %v1527_v34 = vmul.f32 1.442695, %v2526_v27  ;;  %v1506_v35 = vmax.f32 %v1504_v5, %v1505_v21  ;;  %v1531_v36 = vmul.f32 1.442695, %v2528_v24 }
0x1746   :  { %v1535_v37 = vmul.f32 1.442695, %v2530_v25  ;;  %v1539_v42 = vmul.f32 1.442695, %v2532_v26  ;;  %v1543_v46 = vmul.f32 1.442695, %v2534_v28 }
0x1747   :  { %2015 = vpow2.f32 %v1523_v33  ;;  %v2544_v30 = vsub.f32 %v1434_v57, %v1506_v35  ;;  %v2546_v38 = vsub.f32 %v1442_v53, %v1506_v35  ;;  %v2548_v40 = vsub.f32 %v1450_v59, %v1506_v35 }
0x1748   :  { %2017 = vpow2.f32 %v1527_v34  ;;  %v2550_v39 = vsub.f32 %v1458_v55, %v1506_v35  ;;  %v2553_v43 = vsub.f32 %v1466_v8, %v1506_v35  ;;  %v2555_v44 = vsub.f32 %v1474_v4, %v1506_v35 }
0x1749   :  { %v2557_v45 = vsub.f32 %v1482_v20, %v1506_v35  ;;  %2019 = vpow2.f32 %v1531_v36  ;;  %v2560_v47 = vsub.f32 %v1490_v18, %v1506_v35  ;;  %v1525_v48 = vmul.f32 1.442695, %v2544_v30 }
0x174a   :  { %2021 = vpow2.f32 %v1535_v37  ;;  %v1529_v29 = vmul.f32 1.442695, %v2546_v38  ;;  %v1547_v49 = vmul.f32 1.442695, %v2536_v31  ;;  %v1533_v50 = vmul.f32 1.442695, %v2548_v40 }
0x174b   :  { %2023 = vpow2.f32 %v1539_v42  ;;  %v1551_v51 = vmul.f32 1.442695, %v2538_v32  ;;  %v1537_v0 = vmul.f32 1.442695, %v2550_v39  ;;  %v1541_v54 = vmul.f32 1.442695, %v2553_v43 }
0x174c   :  { %2025 = vpow2.f32 %v1543_v46  ;;  %v1545_v57 = vmul.f32 1.442695, %v2555_v44  ;;  %v1549_v60 = vmul.f32 1.442695, %v2557_v45  ;;  %v1553_v41 = vmul.f32 1.442695, %v2560_v47 }
0x174d   :  { %2027 = vpow2.f32 %v1525_v48 }
0x174e   :  { %2029 = vpow2.f32 %v1529_v29 }
0x174f   :  { %2031 = vpow2.f32 %v1547_v49 }
0x1750   :  { %2033 = vpow2.f32 %v1533_v50 }
0x1751   :  { %v2016_v52 = vpop.eup %2015  ;;  %2035 = vpow2.f32 %v1551_v51 }
0x1752   :  { %v2018_v53 = vpop.eup %2017  ;;  %2037 = vpow2.f32 %v1537_v0 }
0x1753   :  { %v1555_v55 = vadd.f32 %v2018_v53, %v2016_v52  ;;  %v2020_v56 = vpop.eup %2019  ;;  %2039 = vpow2.f32 %v1541_v54 }
0x1754   :  { %v2022_v59 = vpop.eup %2021  ;;  %2041 = vpow2.f32 %v1545_v57 }
0x1755   :  { %v1556_v58 = vadd.f32 %v2020_v56, %v1555_v55  ;;  %v2024_v61 = vpop.eup %2023  ;;  %2043 = vpow2.f32 %v1549_v60 }
0x1756   :  { %v2026_v63 = vpop.eup %2025  ;;  %2045 = vpow2.f32 %v1553_v41 }
0x1757   :  { %v1557_v62 = vadd.f32 %v2022_v59, %v1556_v58  ;;  %v2028_v1 = vpop.eup %2027 }
0x1758   :  { %v2030_v3 = vpop.eup %2029 }
0x1759   :  { %v1558_v2 = vadd.f32 %v2024_v61, %v1557_v62  ;;  %v2032_v4 = vpop.eup %2031  ;;  %v1562_v7 = vadd.f32 %v2030_v3, %v2028_v1 }
0x175a   :  { %v2034_v8 = vpop.eup %2033 }
0x175b   :  { %v1559_v6 = vadd.f32 %v2026_v63, %v1558_v2  ;;  %v2036_v9 = vpop.eup %2035  ;;  %v1563_v12 = vadd.f32 %v2034_v8, %v1562_v7 }
0x175c   :  { %v2038_v13 = vpop.eup %2037 }
0x175d   :  { %v1560_v10 = vadd.f32 %v2032_v4, %v1559_v6  ;;  %v1564_v15 = vadd.f32 %v2038_v13, %v1563_v12  ;;  %v2040_v16 = vpop.eup %2039 }
0x175e   :  { %v2042_v18 = vpop.eup %2041 }
0x175f   :  { %v1561_v14 = vadd.f32 %v2036_v9, %v1560_v10  ;;  %v1565_v17 = vadd.f32 %v2040_v16, %v1564_v15  ;;  %v2044_v19 = vpop.eup %2043 }
0x1760   :  { %v2046_v21 = vpop.eup %2045 }
0x1761   :  { %2047 = vlog2.f32 %v1561_v14  ;;  %v1566_v11 = vadd.f32 %v2042_v18, %v1565_v17 }
0x1763   :  { %v1567_v20 = vadd.f32 %v2044_v19, %v1566_v11 }
0x1765   :  { %v1568_v22 = vadd.f32 %v2046_v21, %v1567_v20 }
0x1767   :  { %2049 = vlog2.f32 %v1568_v22 }
0x176b   :  { %v2048_v5 = vpop.eup %2047 }
0x176c   :  { %v1570_v33 = vmul.f32 0.6931472, %v2048_v5 }
0x176e   :  { %v1573_v34 = vsub.f32 %v2524_v23, %v1570_v33  ;;  %v1575_v35 = vsub.f32 %v2526_v27, %v1570_v33  ;;  %v1577_v36 = vsub.f32 %v2528_v24, %v1570_v33  ;;  %v1579_v37 = vsub.f32 %v2530_v25, %v1570_v33 }
0x176f   :  { %v1581_v42 = vsub.f32 %v2532_v26, %v1570_v33  ;;  %v1583_v46 = vsub.f32 %v2534_v28, %v1570_v33  ;;  %v1585_v48 = vsub.f32 %v2536_v31, %v1570_v33  ;;  %v1587_v29 = vsub.f32 %v2538_v32, %v1570_v33 }
0x1770   :  { %1589 = vst [vmem:[#allocation10] sm:$0xff] %v1573_v34  ;;  %1591 = vst [vmem:[#allocation10 + $0x10] sm:$0xff] %v1575_v35 }
0x1771   :  { %1593 = vst [vmem:[#allocation10 + $0x20] sm:$0xff] %v1577_v36  ;;  %1595 = vst [vmem:[#allocation10 + $0x30] sm:$0xff] %v1579_v37  ;;  %v2050_v23 = vpop.eup %2049 }
0x1772   :  { %1597 = vst [vmem:[#allocation10 + $0x40] sm:$0xff] %v1581_v42  ;;  %1599 = vst [vmem:[#allocation10 + $0x50] sm:$0xff] %v1583_v46  ;;  %v1572_v27 = vmul.f32 0.6931472, %v2050_v23 }
0x1773   :  { %1601 = vst [vmem:[#allocation10 + $0x60] sm:$0xff] %v1585_v48  ;;  %1603 = vst [vmem:[#allocation10 + $0x70] sm:$0xff] %v1587_v29 }
0x1774   :  { %v1574_v24 = vsub.f32 %v2544_v30, %v1572_v27  ;;  %v1576_v25 = vsub.f32 %v2546_v38, %v1572_v27  ;;  %v1578_v26 = vsub.f32 %v2548_v40, %v1572_v27  ;;  %v1580_v28 = vsub.f32 %v2550_v39, %v1572_v27 }
0x1775   :  { %v1582_v31 = vsub.f32 %v2553_v43, %v1572_v27  ;;  %v1584_v32 = vsub.f32 %v2555_v44, %v1572_v27  ;;  %v1586_v49 = vsub.f32 %v2557_v45, %v1572_v27  ;;  %v1588_v50 = vsub.f32 %v2560_v47, %v1572_v27 }
0x1776   :  { %1590 = vst [vmem:[#allocation10 + $0x8] sm:$0xff] %v1574_v24  ;;  %1592 = vst [vmem:[#allocation10 + $0x18] sm:$0xff] %v1576_v25 }
0x1777   :  { %1594 = vst [vmem:[#allocation10 + $0x28] sm:$0xff] %v1578_v26  ;;  %1596 = vst [vmem:[#allocation10 + $0x38] sm:$0xff] %v1580_v28 }
0x1778   :  { %1598 = vst [vmem:[#allocation10 + $0x48] sm:$0xff] %v1582_v31  ;;  %1600 = vst [vmem:[#allocation10 + $0x58] sm:$0xff] %v1584_v32 }
0x1779   :  { %1602 = vst [vmem:[#allocation10 + $0x68] sm:$0xff] %v1586_v49  ;;  %1604 = vst [vmem:[#allocation10 + $0x78] sm:$0xff] %v1588_v50 }
0x177a   :  { %2128 = shalt.err (!%p2125_p0)
}
0x177b   :  { %s2129_s10 = scalar_lea.hbm %s2607_s7, 2048 }
0x177c   :  { %p2130_p1 = scmp.ne.s32.totalorder %s2607_s7, %s2129_s10  ;;  %p2133_p2 = scmp.lt.u32.totalorder %s2129_s10, %s2607_s7 }
0x177e   :  { %p2135_p3 = pnand %p2133_p2, %p2130_p1 }
0x1780   :  { %2138 = shalt.err (!%p2135_p3)
}
0x1781   :  { %s2155_s27 = smov 128   ;;  %s2156_s14 = smov 8  }
0x1782   :  { %1616 = dma.vmem_to_hbm [thread:$0]  %s1611_s13, 2048, %s2607_s7, [#allocation6], %s2155_s27, %s2155_s27, %s2156_s14  }
0x1783   :  { %2143 = dma.done.wait [#allocation6], 2048  }
0x1784   :  { %2144 = vsyncadd [#allocation6], 4294965248 }
0x1785   :  { %1620 = vsyncpa [#allocation5], 1 }
0x1786   :  { %1621 = vsyncpa [#allocation8], 1 }
0x1787   :  { %1622 = vsyncpa [#allocation6], 1 }

</bundles_post_ra>
